<compile_context>
chip_gen: v7x
topology: tpu7x:2x2x1
jax: 0.10.0
libtpu: 0.0.40
codegen_flags: <defaults>
</compile_context>

<pallas_src>
import functools

import jax
import jax.numpy as jnp
from jax import lax
from jax.experimental import pallas as pl
from jax.experimental.pallas import tpu as pltpu


def _round_up(a, m):
    return (a + m - 1) // m * m


def _fused_agg_kernel(x_ref, wqkv_ref, bqkv_ref, wo_ref, bo_ref, o_ref,
                      proj_ref, m_ref, l_ref, acc_ref, outt_ref,
                      *, ckp, cvp, cv, co, tq, tk, G, mdt):
    qi = pl.program_id(1)
    kj = pl.program_id(2)
    nq = pl.num_programs(1)
    nk = pl.num_programs(2)

    @pl.when(jnp.logical_and(qi == 0, kj == 0))
    def _project():
        # Stacked q/k/v projection (all three 1x1 convs) for this batch elem,
        # cast ONCE into the matmul dtype.  1/sqrt(ck) already folded into the
        # q rows of wqkv / bqkv in the wrapper.
        proj_ref[...] = (
            jnp.dot(wqkv_ref[...], x_ref[0],
                    preferred_element_type=jnp.float32)
            + bqkv_ref[...]).astype(proj_ref.dtype)

    @pl.when(kj == 0)
    def _init_tile():
        m_ref[...] = jnp.full(m_ref.shape, -jnp.inf, m_ref.dtype)
        l_ref[...] = jnp.zeros(l_ref.shape, l_ref.dtype)
        acc_ref[...] = jnp.zeros(acc_ref.shape, acc_ref.dtype)

    qcol = pl.multiple_of(qi * tq, tq)
    kcol = pl.multiple_of(kj * tk, tk)

    q_i = proj_ref[0:ckp, pl.ds(qcol, tq)]                      # (ckp, tq)
    k_j = proj_ref[ckp:2 * ckp, pl.ds(kcol, tk)]                # (ckp, tk)
    v_j = proj_ref[2 * ckp:2 * ckp + cvp, pl.ds(kcol, tk)]      # (cvp, tk)

    # Transposed scores: contract the channel axis directly -> (tk, tq),
    # lane axis = query positions (lane-dense state downstream).
    s = lax.dot_general(k_j, q_i, (((0,), (0,)), ((), ())),
                        preferred_element_type=jnp.float32)     # (tk, tq)

    # Online softmax over kv tiles; m/l are (1, tq), acc is (cvp, tq).
    m_prev = m_ref[...]
    m_new = jnp.maximum(m_prev, jnp.max(s, axis=0, keepdims=True))
    alpha = jnp.exp(m_prev - m_new)
    p = jnp.exp(s - m_new)                                      # f32 (tk, tq)
    l_ref[...] = alpha * l_ref[...] + jnp.sum(p, axis=0, keepdims=True)
    pv = lax.dot_general(v_j, p.astype(mdt), (((1,), (0,)), ((), ())),
                         preferred_element_type=jnp.float32)    # (cvp, tq)
    acc_ref[...] = alpha * acc_ref[...] + pv
    m_ref[...] = m_new

    @pl.when(kj == nk - 1)
    def _finish_tile():
        # TODO(synk): nn.Dropout on the attention matrix is identity here
        # (eval/inference semantics).
        inv_l = pl.reciprocal(l_ref[...], approx=True)          # (1, tq)
        outt_ref[:, pl.ds(qcol, tq)] = acc_ref[...] * inv_l     # (cvp, tq)

    @pl.when(jnp.logical_and(qi == nq - 1, kj == nk - 1))
    def _epilogue():
        # Fused final 1x1 conv, replicating torch's raw reinterpretation
        #   z = output.view(B, cv, H, W):  z[c, g*cv + d] == out_t[d, c*G + g]
        # so  y4[o, d, g] = sum_c wo[o, c] * out_t[d, c*G:(c+1)*G][_, g] + bo.
        # Lane slices of the (cv, N) transposed accumulator keep the FMAs and
        # the output stores lane-dense.
        # TODO(synk): for large co*cv this unrolled slab-FMA epilogue should
        # become an MXU dot_general over the stacked (cv, cv, G) slabs.
        for o in range(co):
            slab = outt_ref[0:cv, 0:G] * wo_ref[o * cv + 0]
            for c in range(1, cv):
                slab = slab + outt_ref[0:cv, c * G:(c + 1) * G] * wo_ref[o * cv + c]
            o_ref[0, o, :, :] = (slab + bo_ref[o]).astype(o_ref.dtype)


def _pick_tile(n, requested):
    """Choose a tile size dividing n; prefer 128/256-lane multiples, never
    silently fall back to huge n."""
    if requested is not None and n % requested == 0:
        return min(requested, n)
    for t in (512, 256, 128):
        if n % t == 0:
            return t
    for t in range(min(n, 1024), 7, -1):       # largest divisor <= 1024, /8
        if n % t == 0 and t % 8 == 0:
            return t
    if n <= 1024:
        return n
    # TODO(synk): pad N to a lane multiple + mask key columns for ragged N.
    raise ValueError(f"no suitable tile size for N={n}")


def _vmem_estimate(C, N, P, tq, tk, cvp, co, cv, G, item):
    cpad = _round_up(C, 8)
    lane = lambda v: _round_up(v, 128)
    est = 0
    est += 2 * cpad * lane(N) * 4                 # x block (double buffered)
    est += 2 * (P * 128 * 4 + P * 128 * 4)        # wqkv / bqkv blocks
    est += P * lane(N) * item                     # proj scratch
    est += cvp * lane(N) * 4                      # transposed output scratch
    est += (cvp + 16) * lane(tq) * 4              # acc + m + l
    est += 3 * tk * lane(tq) * 4                  # s / p / exp temporaries
    est += 2 * co * cv * lane(G) * 4              # output block (double buf)
    return est


def bottom_agg_block(x, params, *, q_tile=None, kv_tile=None,
                     matmul_dtype=jnp.bfloat16):
    """x: (B, C, H, W) f32 -> (B, co, H, W) f32 (co == C for BottomAggBlock).

    matmul_dtype controls the MXU operand dtype for the two N-scale matmuls
    (bf16 default — MXU-native on v5e/v6e/v7x; pass jnp.float32 for strict
    f32 semantics).  Accumulation is always f32.
    """
    wq, bq = params["wq"], params["bq"]
    wk, bk = params["wk"], params["bk"]
    wv, bv = params["wv"], params["bv"]
    wo, bo = params["wo"], params["bo"]

    B, C, H, W = x.shape
    N = H * W
    ck = wq.shape[0]
    cv = wv.shape[0]
    co = wo.shape[0]

    # TODO(synk): the fused view+conv epilogue assumes cv divides H*W (true
    # for realistic configs of this block); no fallback path is implemented.
    assert N % cv == 0, (N, cv)
    G = N // cv

    tq = _pick_tile(N, q_tile)
    tk = _pick_tile(N, kv_tile)
    nq = N // tq
    nk = N // tk

    mdt = jnp.dtype(matmul_dtype)
    item = mdt.itemsize
    pad_qk = 8 * (4 // item)                       # sublane-packing alignment
    ckp = _round_up(ck, pad_qk)
    cvp = _round_up(cv, 8)
    P = 2 * ckp + cvp

    def pad_rows(a, rows):
        return jnp.pad(a, ((0, rows - a.shape[0]),) + ((0, 0),) * (a.ndim - 1))

    scale = 1.0 / (float(ck) ** 0.5)
    w_qkv = jnp.concatenate([pad_rows(wq * scale, ckp),
                             pad_rows(wk, ckp),
                             pad_rows(wv, cvp)], axis=0)              # (P, C)
    b_qkv = jnp.concatenate([pad_rows((bq * scale)[:, None], ckp),
                             pad_rows(bk[:, None], ckp),
                             pad_rows(bv[:, None], cvp)], axis=0)     # (P, 1)

    xf = x.reshape(B, C, N)
    wo_flat = wo.reshape(co * cv)

    est = _vmem_estimate(C, N, P, tq, tk, cvp, co, cv, G, item)
    vmem_limit = int(min(max(32 * 1024 * 1024, int(1.5 * est) + (4 << 20)),
                         48 * 1024 * 1024))        # portable to v7x's 64 MiB

    kernel = functools.partial(
        _fused_agg_kernel, ckp=ckp, cvp=cvp, cv=cv, co=co, tq=tq, tk=tk, G=G,
        mdt=mdt)

    y4 = pl.pallas_call(
        kernel,
        out_shape=jax.ShapeDtypeStruct((B, co, cv, G), jnp.float32),
        grid_spec=pltpu.PrefetchScalarGridSpec(
            num_scalar_prefetch=0,
            grid=(B, nq, nk),
            in_specs=[
                pl.BlockSpec((1, C, N), lambda b, qi, kj: (b, 0, 0)),   # x
                pl.BlockSpec((P, C), lambda b, qi, kj: (0, 0)),         # W qkv
                pl.BlockSpec((P, 1), lambda b, qi, kj: (0, 0)),         # b qkv
                pl.BlockSpec(memory_space=pltpu.MemorySpace.SMEM),      # wo
                pl.BlockSpec(memory_space=pltpu.MemorySpace.SMEM),      # bo
            ],
            out_specs=pl.BlockSpec((1, co, cv, G),
                                   lambda b, qi, kj: (b, 0, 0, 0)),
            scratch_shapes=[
                pltpu.VMEM((P, N), mdt),            # q/k/v projections
                pltpu.VMEM((1, tq), jnp.float32),   # running max
                pltpu.VMEM((1, tq), jnp.float32),   # running denominator
                pltpu.VMEM((cvp, tq), jnp.float32),  # per-q-tile accumulator
                pltpu.VMEM((cvp, N), jnp.float32),  # transposed attn output
            ]),
        compiler_params=pltpu.CompilerParams(
            dimension_semantics=("parallel", "arbitrary", "arbitrary"),
            vmem_limit_bytes=vmem_limit),
    )(xf, w_qkv, b_qkv, wo_flat, bo)

    # (B, co, cv, G) -> (B, co, G, cv) row-major == (B, co, N): tiny permute.
    return jnp.transpose(y4, (0, 1, 3, 2)).reshape(B, co, H, W)


def reference(x, params):
    """Pure-JAX reference mirroring the PyTorch forward (eval mode)."""
    B, C, H, W = x.shape
    N = H * W
    ck = params["wk"].shape[0]
    cv = params["wv"].shape[0]
    co = params["wo"].shape[0]
    xf = x.reshape(B, C, N)
    q = jnp.einsum("kc,bcn->bkn", params["wq"], xf) + params["bq"][None, :, None]
    k = jnp.einsum("kc,bcn->bkn", params["wk"], xf) + params["bk"][None, :, None]
    v = jnp.einsum("vc,bcn->bvn", params["wv"], xf) + params["bv"][None, :, None]
    att = jnp.matmul(jnp.transpose(q, (0, 2, 1)), k) / (ck ** 0.5)   # (B, N, N)
    att = jax.nn.softmax(att, axis=-1)
    out = jnp.matmul(att, jnp.transpose(v, (0, 2, 1)))               # (B, N, cv)
    z = out.reshape(B, cv, N)                                        # torch .view
    y = jnp.einsum("ov,bvn->bon", params["wo"], z) + params["bo"][None, :, None]
    return y.reshape(B, co, H, W)


if __name__ == "__main__":
    B, C, H, W = 2, 4, 16, 16
    ck, cv = 8, 8
    co = C  # BottomAggBlock: out_channels == in_channels

    key = jax.random.PRNGKey(0)
    keys = jax.random.split(key, 9)
    x = jax.random.normal(keys[0], (B, C, H, W), jnp.float32)
    params = {
        "wq": jax.random.normal(keys[1], (ck, C), jnp.float32) * 0.2,
        "bq": jax.random.normal(keys[2], (ck,), jnp.float32) * 0.05,
        "wk": jax.random.normal(keys[3], (ck, C), jnp.float32) * 0.2,
        "bk": jax.random.normal(keys[4], (ck,), jnp.float32) * 0.05,
        "wv": jax.random.normal(keys[5], (cv, C), jnp.float32) * 0.2,
        "bv": jax.random.normal(keys[6], (cv,), jnp.float32) * 0.05,
        "wo": jax.random.normal(keys[7], (co, cv), jnp.float32) * 0.2,
        "bo": jax.random.normal(keys[8], (co,), jnp.float32) * 0.05,
    }

    ref = reference(x, params)

    # q_tile=kv_tile=128 -> nq=nk=2 for N=256: exercises query tiling, the
    # online-softmax reduction, the transposed-output staging and the fused
    # view+conv epilogue.
    out_bf16 = jax.block_until_ready(
        bottom_agg_block(x, params, q_tile=128, kv_tile=128,
                         matmul_dtype=jnp.bfloat16))
    assert out_bf16.shape == (B, co, H, W), out_bf16.shape
    err_bf16 = float(jnp.max(jnp.abs(out_bf16 - ref)))
    assert jnp.allclose(out_bf16, ref, atol=3e-2, rtol=3e-2), err_bf16

    # Strict-f32 MXU-operand path at tight tolerance (covers the approx
    # reciprocal and online-softmax reassociation only).
    out_f32 = jax.block_until_ready(
        bottom_agg_block(x, params, q_tile=128, kv_tile=128,
                         matmul_dtype=jnp.float32))
    err_f32 = float(jnp.max(jnp.abs(out_f32 - ref)))
    assert jnp.allclose(out_f32, ref, atol=5e-3, rtol=5e-3), err_f32

    print("KERNEL_OK")
</pallas_src>

<mosaic_0001>
module attributes {stable_mosaic.version = 11 : i64} {
  func.func @_fused_agg_kernel(%arg0: i32, %arg1: i32, %arg2: i32, %arg3: memref<1x4x256xf32, #tpu.memory_space<vmem>>, %arg4: memref<40x4xf32, #tpu.memory_space<vmem>>, %arg5: memref<40x1xf32, #tpu.memory_space<vmem>>, %arg6: memref<32xf32, #tpu.memory_space<smem>>, %arg7: memref<4xf32, #tpu.memory_space<smem>>, %arg8: memref<1x4x8x32xf32, #tpu.memory_space<vmem>>, %arg9: memref<40x256xbf16, #tpu.memory_space<vmem>>, %arg10: memref<1x128xf32, #tpu.memory_space<vmem>>, %arg11: memref<1x128xf32, #tpu.memory_space<vmem>>, %arg12: memref<8x128xf32, #tpu.memory_space<vmem>>, %arg13: memref<8x256xf32, #tpu.memory_space<vmem>>) attributes {dimension_semantics = [#tpu.dimension_semantics<parallel>, #tpu.dimension_semantics<arbitrary>, #tpu.dimension_semantics<arbitrary>], iteration_bounds = array<i64: 2, 2, 2>, scalar_prefetch = 0 : i64, scratch_operands = 5 : i64, tpu.core_type = #tpu.core_type<tc>, window_params = [{transform_indices = @transform_0, window_bounds = array<i64: 1, 4, 256>}, {pipeline_mode = #tpu.pipeline_mode<synchronous>, transform_indices = @transform_1, window_bounds = array<i64: 40, 4>}, {pipeline_mode = #tpu.pipeline_mode<synchronous>, transform_indices = @transform_2, window_bounds = array<i64: 40, 1>}, {transform_indices = @transform_3, window_bounds = array<i64: 32>}, {transform_indices = @transform_4, window_bounds = array<i64: 4>}, {transform_indices = @transform_5, window_bounds = array<i64: 1, 4, 8, 32>}]} {
    %c0_i32 = arith.constant 0 : i32
    %0 = arith.cmpi eq, %arg1, %c0_i32 : i32
    %c0_i32_0 = arith.constant 0 : i32
    %1 = arith.cmpi eq, %arg2, %c0_i32_0 : i32
    %2 = arith.andi %0, %1 : i1
    %3 = arith.extui %2 : i1 to i32
    %c0_i32_1 = arith.constant 0 : i32
    %4 = arith.cmpi ne, %3, %c0_i32_1 : i32
    scf.if %4 {
      %c0_24 = arith.constant 0 : index
      %c0_25 = arith.constant 0 : index
      %50 = vector.load %arg4[%c0_24, %c0_25] : memref<40x4xf32, #tpu.memory_space<vmem>>, vector<40x4xf32>
      %c0_26 = arith.constant 0 : index
      %c0_27 = arith.constant 0 : index
      %c0_28 = arith.constant 0 : index
      %51 = vector.load %arg3[%c0_26, %c0_27, %c0_28] : memref<1x4x256xf32, #tpu.memory_space<vmem>>, vector<1x4x256xf32>
      %52 = vector.shape_cast %51 : vector<1x4x256xf32> to vector<4x256xf32>
      %cst_29 = arith.constant dense<0.000000e+00> : vector<40x256xf32>
      %53 = tpu.matmul %50, %52, %cst_29 {dimension_numbers = #tpu.dot_dimension_numbers<[1], [0], [0], [1], [0, 0, 1, 1], [], []>} : vector<40x4xf32>, vector<4x256xf32>, vector<40x256xf32> -> vector<40x256xf32>
      %c0_30 = arith.constant 0 : index
      %c0_31 = arith.constant 0 : index
      %54 = vector.load %arg5[%c0_30, %c0_31] : memref<40x1xf32, #tpu.memory_space<vmem>>, vector<40x1xf32>
      %55 = vector.broadcast %54 : vector<40x1xf32> to vector<40x256xf32>
      %56 = arith.addf %53, %55 : vector<40x256xf32>
      %57 = arith.truncf %56 : vector<40x256xf32> to vector<40x256xbf16>
      %c0_32 = arith.constant 0 : index
      %c0_33 = arith.constant 0 : index
      %58 = vector.load %arg9[%c0_32, %c0_33] : memref<40x256xbf16, #tpu.memory_space<vmem>>, vector<40x256xbf16>
      tpu.vector_store %arg9[%c0_32, %c0_33], %57 {strides = array<i32>} : memref<40x256xbf16, #tpu.memory_space<vmem>>, vector<40x256xbf16>,
    } else {
    }
    %c0_i32_2 = arith.constant 0 : i32
    %5 = arith.cmpi eq, %arg2, %c0_i32_2 : i32
    %6 = arith.extui %5 : i1 to i32
    %c0_i32_3 = arith.constant 0 : i32
    %7 = arith.cmpi ne, %6, %c0_i32_3 : i32
    scf.if %7 {
      %cst_24 = arith.constant 0xFF800000 : f32
      %50 = vector.broadcast %cst_24 : f32 to vector<1x128xf32>
      %c0_25 = arith.constant 0 : index
      %c0_26 = arith.constant 0 : index
      %51 = vector.load %arg10[%c0_25, %c0_26] : memref<1x128xf32, #tpu.memory_space<vmem>>, vector<1x128xf32>
      tpu.vector_store %arg10[%c0_25, %c0_26], %50 {strides = array<i32>} : memref<1x128xf32, #tpu.memory_space<vmem>>, vector<1x128xf32>,
      %cst_27 = arith.constant 0.000000e+00 : f32
      %52 = vector.broadcast %cst_27 : f32 to vector<1x128xf32>
      %c0_28 = arith.constant 0 : index
      %c0_29 = arith.constant 0 : index
      %53 = vector.load %arg11[%c0_28, %c0_29] : memref<1x128xf32, #tpu.memory_space<vmem>>, vector<1x128xf32>
      tpu.vector_store %arg11[%c0_28, %c0_29], %52 {strides = array<i32>} : memref<1x128xf32, #tpu.memory_space<vmem>>, vector<1x128xf32>,
      %cst_30 = arith.constant 0.000000e+00 : f32
      %54 = vector.broadcast %cst_30 : f32 to vector<8x128xf32>
      %c0_31 = arith.constant 0 : index
      %c0_32 = arith.constant 0 : index
      %55 = vector.load %arg12[%c0_31, %c0_32] : memref<8x128xf32, #tpu.memory_space<vmem>>, vector<8x128xf32>
      tpu.vector_store %arg12[%c0_31, %c0_32], %54 {strides = array<i32>} : memref<8x128xf32, #tpu.memory_space<vmem>>, vector<8x128xf32>,
    } else {
    }
    %c128_i32 = arith.constant 128 : i32
    %8 = arith.muli %arg1, %c128_i32 : i32
    %9 = tpu.assume_multiple %8, 128 : i32
    %c128_i32_4 = arith.constant 128 : i32
    %10 = arith.muli %arg2, %c128_i32_4 : i32
    %11 = tpu.assume_multiple %10, 128 : i32
    %c0 = arith.constant 0 : index
    %12 = arith.index_cast %9 : i32 to index
    %13 = vector.load %arg9[%c0, %12] : memref<40x256xbf16, #tpu.memory_space<vmem>>, vector<16x128xbf16>
    %c16 = arith.constant 16 : index
    %14 = arith.index_cast %11 : i32 to index
    %15 = vector.load %arg9[%c16, %14] : memref<40x256xbf16, #tpu.memory_space<vmem>>, vector<16x128xbf16>
    %c32 = arith.constant 32 : index
    %16 = arith.index_cast %11 : i32 to index
    %17 = vector.load %arg9[%c32, %16] : memref<40x256xbf16, #tpu.memory_space<vmem>>, vector<8x128xbf16>
    %cst = arith.constant dense<0.000000e+00> : vector<128x128xf32>
    %18 = tpu.matmul %15, %13, %cst {dimension_numbers = #tpu.dot_dimension_numbers<[0], [0], [1], [1], [0, 1, 1, 1], [], []>} : vector<16x128xbf16>, vector<16x128xbf16>, vector<128x128xf32> -> vector<128x128xf32>
    %c0_5 = arith.constant 0 : index
    %c0_6 = arith.constant 0 : index
    %19 = vector.load %arg10[%c0_5, %c0_6] : memref<1x128xf32, #tpu.memory_space<vmem>>, vector<1x128xf32>
    %cst_7 = arith.constant dense<0xFF800000> : vector<128xf32>
    %20 = vector.multi_reduction <maximumf>, %18, %cst_7 [0] : vector<128x128xf32> to vector<128xf32>
    %21 = vector.shape_cast %20 : vector<128xf32> to vector<1x128xf32>
    %22 = arith.maximumf %19, %21 : vector<1x128xf32>
    %23 = arith.subf %19, %22 : vector<1x128xf32>
    %24 = math.exp %23 : vector<1x128xf32>
    %25 = vector.broadcast %22 : vector<1x128xf32> to vector<128x128xf32>
    %26 = arith.subf %18, %25 : vector<128x128xf32>
    %27 = math.exp %26 : vector<128x128xf32>
    %c0_8 = arith.constant 0 : index
    %c0_9 = arith.constant 0 : index
    %28 = vector.load %arg11[%c0_8, %c0_9] : memref<1x128xf32, #tpu.memory_space<vmem>>, vector<1x128xf32>
    %29 = arith.mulf %24, %28 : vector<1x128xf32>
    %cst_10 = arith.constant dense<0.000000e+00> : vector<128xf32>
    %30 = vector.multi_reduction <add>, %27, %cst_10 [0] : vector<128x128xf32> to vector<128xf32>
    %31 = vector.shape_cast %30 : vector<128xf32> to vector<1x128xf32>
    %32 = arith.addf %29, %31 : vector<1x128xf32>
    %c0_11 = arith.constant 0 : index
    %c0_12 = arith.constant 0 : index
    %33 = vector.load %arg11[%c0_11, %c0_12] : memref<1x128xf32, #tpu.memory_space<vmem>>, vector<1x128xf32>
    tpu.vector_store %arg11[%c0_11, %c0_12], %32 {strides = array<i32>} : memref<1x128xf32, #tpu.memory_space<vmem>>, vector<1x128xf32>,
    %34 = arith.truncf %27 : vector<128x128xf32> to vector<128x128xbf16>
    %cst_13 = arith.constant dense<0.000000e+00> : vector<8x128xf32>
    %35 = tpu.matmul %17, %34, %cst_13 {dimension_numbers = #tpu.dot_dimension_numbers<[1], [0], [0], [1], [0, 0, 1, 1], [], []>} : vector<8x128xbf16>, vector<128x128xbf16>, vector<8x128xf32> -> vector<8x128xf32>
    %c0_14 = arith.constant 0 : index
    %c0_15 = arith.constant 0 : index
    %36 = vector.load %arg12[%c0_14, %c0_15] : memref<8x128xf32, #tpu.memory_space<vmem>>, vector<8x128xf32>
    %37 = vector.broadcast %24 : vector<1x128xf32> to vector<8x128xf32>
    %38 = arith.mulf %37, %36 : vector<8x128xf32>
    %39 = arith.addf %38, %35 : vector<8x128xf32>
    %c0_16 = arith.constant 0 : index
    %c0_17 = arith.constant 0 : index
    %40 = vector.load %arg12[%c0_16, %c0_17] : memref<8x128xf32, #tpu.memory_space<vmem>>, vector<8x128xf32>
    tpu.vector_store %arg12[%c0_16, %c0_17], %39 {strides = array<i32>} : memref<8x128xf32, #tpu.memory_space<vmem>>, vector<8x128xf32>,
    %c0_18 = arith.constant 0 : index
    %c0_19 = arith.constant 0 : index
    %41 = vector.load %arg10[%c0_18, %c0_19] : memref<1x128xf32, #tpu.memory_space<vmem>>, vector<1x128xf32>
    tpu.vector_store %arg10[%c0_18, %c0_19], %22 {strides = array<i32>} : memref<1x128xf32, #tpu.memory_space<vmem>>, vector<1x128xf32>,
    %c1_i32 = arith.constant 1 : i32
    %42 = arith.cmpi eq, %arg2, %c1_i32 : i32
    %43 = arith.extui %42 : i1 to i32
    %c0_i32_20 = arith.constant 0 : i32
    %44 = arith.cmpi ne, %43, %c0_i32_20 : i32
    scf.if %44 {
      %c0_24 = arith.constant 0 : index
      %c0_25 = arith.constant 0 : index
      %50 = vector.load %arg11[%c0_24, %c0_25] : memref<1x128xf32, #tpu.memory_space<vmem>>, vector<1x128xf32>
      %51 = tpu.reciprocal %50 {approx = true} : vector<1x128xf32> -> vector<1x128xf32>
      %c0_26 = arith.constant 0 : index
      %c0_27 = arith.constant 0 : index
      %52 = vector.load %arg12[%c0_26, %c0_27] : memref<8x128xf32, #tpu.memory_space<vmem>>, vector<8x128xf32>
      %53 = vector.broadcast %51 : vector<1x128xf32> to vector<8x128xf32>
      %54 = arith.mulf %52, %53 : vector<8x128xf32>
      %c0_28 = arith.constant 0 : index
      %55 = arith.index_cast %9 : i32 to index
      %56 = vector.load %arg13[%c0_28, %55] : memref<8x256xf32, #tpu.memory_space<vmem>>, vector<8x128xf32>
      tpu.vector_store %arg13[%c0_28, %55], %54 {strides = array<i32>} : memref<8x256xf32, #tpu.memory_space<vmem>>, vector<8x128xf32>,
    } else {
    }
    %c1_i32_21 = arith.constant 1 : i32
    %45 = arith.cmpi eq, %arg1, %c1_i32_21 : i32
    %c1_i32_22 = arith.constant 1 : i32
    %46 = arith.cmpi eq, %arg2, %c1_i32_22 : i32
    %47 = arith.andi %45, %46 : i1
    %48 = arith.extui %47 : i1 to i32
    %c0_i32_23 = arith.constant 0 : i32
    %49 = arith.cmpi ne, %48, %c0_i32_23 : i32
    scf.if %49 {
      %c0_24 = arith.constant 0 : index
      %c0_25 = arith.constant 0 : index
      %50 = vector.load %arg13[%c0_24, %c0_25] : memref<8x256xf32, #tpu.memory_space<vmem>>, vector<8x32xf32>
      %c0_26 = arith.constant 0 : index
      %51 = memref.load %arg6[%c0_26] : memref<32xf32, #tpu.memory_space<smem>>
      %52 = vector.broadcast %51 : f32 to vector<8x32xf32>
      %53 = arith.mulf %50, %52 : vector<8x32xf32>
      %c0_27 = arith.constant 0 : index
      %c32_28 = arith.constant 32 : index
      %54 = vector.load %arg13[%c0_27, %c32_28] : memref<8x256xf32, #tpu.memory_space<vmem>>, vector<8x32xf32>
      %c1 = arith.constant 1 : index
      %55 = memref.load %arg6[%c1] : memref<32xf32, #tpu.memory_space<smem>>
      %56 = vector.broadcast %55 : f32 to vector<8x32xf32>
      %57 = arith.mulf %54, %56 : vector<8x32xf32>
      %58 = arith.addf %53, %57 : vector<8x32xf32>
      %c0_29 = arith.constant 0 : index
      %c64 = arith.constant 64 : index
      %59 = vector.load %arg13[%c0_29, %c64] : memref<8x256xf32, #tpu.memory_space<vmem>>, vector<8x32xf32>
      %c2 = arith.constant 2 : index
      %60 = memref.load %arg6[%c2] : memref<32xf32, #tpu.memory_space<smem>>
      %61 = vector.broadcast %60 : f32 to vector<8x32xf32>
      %62 = arith.mulf %59, %61 : vector<8x32xf32>
      %63 = arith.addf %58, %62 : vector<8x32xf32>
      %c0_30 = arith.constant 0 : index
      %c96 = arith.constant 96 : index
      %64 = vector.load %arg13[%c0_30, %c96] : memref<8x256xf32, #tpu.memory_space<vmem>>, vector<8x32xf32>
      %c3 = arith.constant 3 : index
      %65 = memref.load %arg6[%c3] : memref<32xf32, #tpu.memory_space<smem>>
      %66 = vector.broadcast %65 : f32 to vector<8x32xf32>
      %67 = arith.mulf %64, %66 : vector<8x32xf32>
      %68 = arith.addf %63, %67 : vector<8x32xf32>
      %c0_31 = arith.constant 0 : index
      %c128 = arith.constant 128 : index
      %69 = vector.load %arg13[%c0_31, %c128] : memref<8x256xf32, #tpu.memory_space<vmem>>, vector<8x32xf32>
      %c4 = arith.constant 4 : index
      %70 = memref.load %arg6[%c4] : memref<32xf32, #tpu.memory_space<smem>>
      %71 = vector.broadcast %70 : f32 to vector<8x32xf32>
      %72 = arith.mulf %69, %71 : vector<8x32xf32>
      %73 = arith.addf %68, %72 : vector<8x32xf32>
      %c0_32 = arith.constant 0 : index
      %c160 = arith.constant 160 : index
      %74 = vector.load %arg13[%c0_32, %c160] : memref<8x256xf32, #tpu.memory_space<vmem>>, vector<8x32xf32>
      %c5 = arith.constant 5 : index
      %75 = memref.load %arg6[%c5] : memref<32xf32, #tpu.memory_space<smem>>
      %76 = vector.broadcast %75 : f32 to vector<8x32xf32>
      %77 = arith.mulf %74, %76 : vector<8x32xf32>
      %78 = arith.addf %73, %77 : vector<8x32xf32>
      %c0_33 = arith.constant 0 : index
      %c192 = arith.constant 192 : index
      %79 = vector.load %arg13[%c0_33, %c192] : memref<8x256xf32, #tpu.memory_space<vmem>>, vector<8x32xf32>
      %c6 = arith.constant 6 : index
      %80 = memref.load %arg6[%c6] : memref<32xf32, #tpu.memory_space<smem>>
      %81 = vector.broadcast %80 : f32 to vector<8x32xf32>
      %82 = arith.mulf %79, %81 : vector<8x32xf32>
      %83 = arith.addf %78, %82 : vector<8x32xf32>
      %c0_34 = arith.constant 0 : index
      %c224 = arith.constant 224 : index
      %84 = vector.load %arg13[%c0_34, %c224] : memref<8x256xf32, #tpu.memory_space<vmem>>, vector<8x32xf32>
      %c7 = arith.constant 7 : index
      %85 = memref.load %arg6[%c7] : memref<32xf32, #tpu.memory_space<smem>>
      %86 = vector.broadcast %85 : f32 to vector<8x32xf32>
      %87 = arith.mulf %84, %86 : vector<8x32xf32>
      %88 = arith.addf %83, %87 : vector<8x32xf32>
      %c0_35 = arith.constant 0 : index
      %89 = memref.load %arg7[%c0_35] : memref<4xf32, #tpu.memory_space<smem>>
      %90 = vector.broadcast %89 : f32 to vector<8x32xf32>
      %91 = arith.addf %88, %90 : vector<8x32xf32>
      %c0_36 = arith.constant 0 : index
      %c0_37 = arith.constant 0 : index
      %c0_38 = arith.constant 0 : index
      %c0_39 = arith.constant 0 : index
      %92 = vector.load %arg8[%c0_36, %c0_37, %c0_38, %c0_39] : memref<1x4x8x32xf32, #tpu.memory_space<vmem>>, vector<1x1x8x32xf32>
      %93 = vector.shape_cast %92 : vector<1x1x8x32xf32> to vector<8x32xf32>
      %94 = vector.shape_cast %91 : vector<8x32xf32> to vector<1x1x8x32xf32>
      tpu.vector_store %arg8[%c0_36, %c0_37, %c0_38, %c0_39], %94 {strides = array<i32>} : memref<1x4x8x32xf32, #tpu.memory_space<vmem>>, vector<1x1x8x32xf32>,
      %c0_40 = arith.constant 0 : index
      %c0_41 = arith.constant 0 : index
      %95 = vector.load %arg13[%c0_40, %c0_41] : memref<8x256xf32, #tpu.memory_space<vmem>>, vector<8x32xf32>
      %c8 = arith.constant 8 : index
      %96 = memref.load %arg6[%c8] : memref<32xf32, #tpu.memory_space<smem>>
      %97 = vector.broadcast %96 : f32 to vector<8x32xf32>
      %98 = arith.mulf %95, %97 : vector<8x32xf32>
      %c0_42 = arith.constant 0 : index
      %c32_43 = arith.constant 32 : index
      %99 = vector.load %arg13[%c0_42, %c32_43] : memref<8x256xf32, #tpu.memory_space<vmem>>, vector<8x32xf32>
      %c9 = arith.constant 9 : index
      %100 = memref.load %arg6[%c9] : memref<32xf32, #tpu.memory_space<smem>>
      %101 = vector.broadcast %100 : f32 to vector<8x32xf32>
      %102 = arith.mulf %99, %101 : vector<8x32xf32>
      %103 = arith.addf %98, %102 : vector<8x32xf32>
      %c0_44 = arith.constant 0 : index
      %c64_45 = arith.constant 64 : index
      %104 = vector.load %arg13[%c0_44, %c64_45] : memref<8x256xf32, #tpu.memory_space<vmem>>, vector<8x32xf32>
      %c10 = arith.constant 10 : index
      %105 = memref.load %arg6[%c10] : memref<32xf32, #tpu.memory_space<smem>>
      %106 = vector.broadcast %105 : f32 to vector<8x32xf32>
      %107 = arith.mulf %104, %106 : vector<8x32xf32>
      %108 = arith.addf %103, %107 : vector<8x32xf32>
      %c0_46 = arith.constant 0 : index
      %c96_47 = arith.constant 96 : index
      %109 = vector.load %arg13[%c0_46, %c96_47] : memref<8x256xf32, #tpu.memory_space<vmem>>, vector<8x32xf32>
      %c11 = arith.constant 11 : index
      %110 = memref.load %arg6[%c11] : memref<32xf32, #tpu.memory_space<smem>>
      %111 = vector.broadcast %110 : f32 to vector<8x32xf32>
      %112 = arith.mulf %109, %111 : vector<8x32xf32>
      %113 = arith.addf %108, %112 : vector<8x32xf32>
      %c0_48 = arith.constant 0 : index
      %c128_49 = arith.constant 128 : index
      %114 = vector.load %arg13[%c0_48, %c128_49] : memref<8x256xf32, #tpu.memory_space<vmem>>, vector<8x32xf32>
      %c12 = arith.constant 12 : index
      %115 = memref.load %arg6[%c12] : memref<32xf32, #tpu.memory_space<smem>>
      %116 = vector.broadcast %115 : f32 to vector<8x32xf32>
      %117 = arith.mulf %114, %116 : vector<8x32xf32>
      %118 = arith.addf %113, %117 : vector<8x32xf32>
      %c0_50 = arith.constant 0 : index
      %c160_51 = arith.constant 160 : index
      %119 = vector.load %arg13[%c0_50, %c160_51] : memref<8x256xf32, #tpu.memory_space<vmem>>, vector<8x32xf32>
      %c13 = arith.constant 13 : index
      %120 = memref.load %arg6[%c13] : memref<32xf32, #tpu.memory_space<smem>>
      %121 = vector.broadcast %120 : f32 to vector<8x32xf32>
      %122 = arith.mulf %119, %121 : vector<8x32xf32>
      %123 = arith.addf %118, %122 : vector<8x32xf32>
      %c0_52 = arith.constant 0 : index
      %c192_53 = arith.constant 192 : index
      %124 = vector.load %arg13[%c0_52, %c192_53] : memref<8x256xf32, #tpu.memory_space<vmem>>, vector<8x32xf32>
      %c14 = arith.constant 14 : index
      %125 = memref.load %arg6[%c14] : memref<32xf32, #tpu.memory_space<smem>>
      %126 = vector.broadcast %125 : f32 to vector<8x32xf32>
      %127 = arith.mulf %124, %126 : vector<8x32xf32>
      %128 = arith.addf %123, %127 : vector<8x32xf32>
      %c0_54 = arith.constant 0 : index
      %c224_55 = arith.constant 224 : index
      %129 = vector.load %arg13[%c0_54, %c224_55] : memref<8x256xf32, #tpu.memory_space<vmem>>, vector<8x32xf32>
      %c15 = arith.constant 15 : index
      %130 = memref.load %arg6[%c15] : memref<32xf32, #tpu.memory_space<smem>>
      %131 = vector.broadcast %130 : f32 to vector<8x32xf32>
      %132 = arith.mulf %129, %131 : vector<8x32xf32>
      %133 = arith.addf %128, %132 : vector<8x32xf32>
      %c1_56 = arith.constant 1 : index
      %134 = memref.load %arg7[%c1_56] : memref<4xf32, #tpu.memory_space<smem>>
      %135 = vector.broadcast %134 : f32 to vector<8x32xf32>
      %136 = arith.addf %133, %135 : vector<8x32xf32>
      %c0_57 = arith.constant 0 : index
      %c1_58 = arith.constant 1 : index
      %c0_59 = arith.constant 0 : index
      %c0_60 = arith.constant 0 : index
      %137 = vector.load %arg8[%c0_57, %c1_58, %c0_59, %c0_60] : memref<1x4x8x32xf32, #tpu.memory_space<vmem>>, vector<1x1x8x32xf32>
      %138 = vector.shape_cast %137 : vector<1x1x8x32xf32> to vector<8x32xf32>
      %139 = vector.shape_cast %136 : vector<8x32xf32> to vector<1x1x8x32xf32>
      tpu.vector_store %arg8[%c0_57, %c1_58, %c0_59, %c0_60], %139 {strides = array<i32>} : memref<1x4x8x32xf32, #tpu.memory_space<vmem>>, vector<1x1x8x32xf32>,
      %c0_61 = arith.constant 0 : index
      %c0_62 = arith.constant 0 : index
      %140 = vector.load %arg13[%c0_61, %c0_62] : memref<8x256xf32, #tpu.memory_space<vmem>>, vector<8x32xf32>
      %c16_63 = arith.constant 16 : index
      %141 = memref.load %arg6[%c16_63] : memref<32xf32, #tpu.memory_space<smem>>
      %142 = vector.broadcast %141 : f32 to vector<8x32xf32>
      %143 = arith.mulf %140, %142 : vector<8x32xf32>
      %c0_64 = arith.constant 0 : index
      %c32_65 = arith.constant 32 : index
      %144 = vector.load %arg13[%c0_64, %c32_65] : memref<8x256xf32, #tpu.memory_space<vmem>>, vector<8x32xf32>
      %c17 = arith.constant 17 : index
      %145 = memref.load %arg6[%c17] : memref<32xf32, #tpu.memory_space<smem>>
      %146 = vector.broadcast %145 : f32 to vector<8x32xf32>
      %147 = arith.mulf %144, %146 : vector<8x32xf32>
      %148 = arith.addf %143, %147 : vector<8x32xf32>
      %c0_66 = arith.constant 0 : index
      %c64_67 = arith.constant 64 : index
      %149 = vector.load %arg13[%c0_66, %c64_67] : memref<8x256xf32, #tpu.memory_space<vmem>>, vector<8x32xf32>
      %c18 = arith.constant 18 : index
      %150 = memref.load %arg6[%c18] : memref<32xf32, #tpu.memory_space<smem>>
      %151 = vector.broadcast %150 : f32 to vector<8x32xf32>
      %152 = arith.mulf %149, %151 : vector<8x32xf32>
      %153 = arith.addf %148, %152 : vector<8x32xf32>
      %c0_68 = arith.constant 0 : index
      %c96_69 = arith.constant 96 : index
      %154 = vector.load %arg13[%c0_68, %c96_69] : memref<8x256xf32, #tpu.memory_space<vmem>>, vector<8x32xf32>
      %c19 = arith.constant 19 : index
      %155 = memref.load %arg6[%c19] : memref<32xf32, #tpu.memory_space<smem>>
      %156 = vector.broadcast %155 : f32 to vector<8x32xf32>
      %157 = arith.mulf %154, %156 : vector<8x32xf32>
      %158 = arith.addf %153, %157 : vector<8x32xf32>
      %c0_70 = arith.constant 0 : index
      %c128_71 = arith.constant 128 : index
      %159 = vector.load %arg13[%c0_70, %c128_71] : memref<8x256xf32, #tpu.memory_space<vmem>>, vector<8x32xf32>
      %c20 = arith.constant 20 : index
      %160 = memref.load %arg6[%c20] : memref<32xf32, #tpu.memory_space<smem>>
      %161 = vector.broadcast %160 : f32 to vector<8x32xf32>
      %162 = arith.mulf %159, %161 : vector<8x32xf32>
      %163 = arith.addf %158, %162 : vector<8x32xf32>
      %c0_72 = arith.constant 0 : index
      %c160_73 = arith.constant 160 : index
      %164 = vector.load %arg13[%c0_72, %c160_73] : memref<8x256xf32, #tpu.memory_space<vmem>>, vector<8x32xf32>
      %c21 = arith.constant 21 : index
      %165 = memref.load %arg6[%c21] : memref<32xf32, #tpu.memory_space<smem>>
      %166 = vector.broadcast %165 : f32 to vector<8x32xf32>
      %167 = arith.mulf %164, %166 : vector<8x32xf32>
      %168 = arith.addf %163, %167 : vector<8x32xf32>
      %c0_74 = arith.constant 0 : index
      %c192_75 = arith.constant 192 : index
      %169 = vector.load %arg13[%c0_74, %c192_75] : memref<8x256xf32, #tpu.memory_space<vmem>>, vector<8x32xf32>
      %c22 = arith.constant 22 : index
      %170 = memref.load %arg6[%c22] : memref<32xf32, #tpu.memory_space<smem>>
      %171 = vector.broadcast %170 : f32 to vector<8x32xf32>
      %172 = arith.mulf %169, %171 : vector<8x32xf32>
      %173 = arith.addf %168, %172 : vector<8x32xf32>
      %c0_76 = arith.constant 0 : index
      %c224_77 = arith.constant 224 : index
      %174 = vector.load %arg13[%c0_76, %c224_77] : memref<8x256xf32, #tpu.memory_space<vmem>>, vector<8x32xf32>
      %c23 = arith.constant 23 : index
      %175 = memref.load %arg6[%c23] : memref<32xf32, #tpu.memory_space<smem>>
      %176 = vector.broadcast %175 : f32 to vector<8x32xf32>
      %177 = arith.mulf %174, %176 : vector<8x32xf32>
      %178 = arith.addf %173, %177 : vector<8x32xf32>
      %c2_78 = arith.constant 2 : index
      %179 = memref.load %arg7[%c2_78] : memref<4xf32, #tpu.memory_space<smem>>
      %180 = vector.broadcast %179 : f32 to vector<8x32xf32>
      %181 = arith.addf %178, %180 : vector<8x32xf32>
      %c0_79 = arith.constant 0 : index
      %c2_80 = arith.constant 2 : index
      %c0_81 = arith.constant 0 : index
      %c0_82 = arith.constant 0 : index
      %182 = vector.load %arg8[%c0_79, %c2_80, %c0_81, %c0_82] : memref<1x4x8x32xf32, #tpu.memory_space<vmem>>, vector<1x1x8x32xf32>
      %183 = vector.shape_cast %182 : vector<1x1x8x32xf32> to vector<8x32xf32>
      %184 = vector.shape_cast %181 : vector<8x32xf32> to vector<1x1x8x32xf32>
      tpu.vector_store %arg8[%c0_79, %c2_80, %c0_81, %c0_82], %184 {strides = array<i32>} : memref<1x4x8x32xf32, #tpu.memory_space<vmem>>, vector<1x1x8x32xf32>,
      %c0_83 = arith.constant 0 : index
      %c0_84 = arith.constant 0 : index
      %185 = vector.load %arg13[%c0_83, %c0_84] : memref<8x256xf32, #tpu.memory_space<vmem>>, vector<8x32xf32>
      %c24 = arith.constant 24 : index
      %186 = memref.load %arg6[%c24] : memref<32xf32, #tpu.memory_space<smem>>
      %187 = vector.broadcast %186 : f32 to vector<8x32xf32>
      %188 = arith.mulf %185, %187 : vector<8x32xf32>
      %c0_85 = arith.constant 0 : index
      %c32_86 = arith.constant 32 : index
      %189 = vector.load %arg13[%c0_85, %c32_86] : memref<8x256xf32, #tpu.memory_space<vmem>>, vector<8x32xf32>
      %c25 = arith.constant 25 : index
      %190 = memref.load %arg6[%c25] : memref<32xf32, #tpu.memory_space<smem>>
      %191 = vector.broadcast %190 : f32 to vector<8x32xf32>
      %192 = arith.mulf %189, %191 : vector<8x32xf32>
      %193 = arith.addf %188, %192 : vector<8x32xf32>
      %c0_87 = arith.constant 0 : index
      %c64_88 = arith.constant 64 : index
      %194 = vector.load %arg13[%c0_87, %c64_88] : memref<8x256xf32, #tpu.memory_space<vmem>>, vector<8x32xf32>
      %c26 = arith.constant 26 : index
      %195 = memref.load %arg6[%c26] : memref<32xf32, #tpu.memory_space<smem>>
      %196 = vector.broadcast %195 : f32 to vector<8x32xf32>
      %197 = arith.mulf %194, %196 : vector<8x32xf32>
      %198 = arith.addf %193, %197 : vector<8x32xf32>
      %c0_89 = arith.constant 0 : index
      %c96_90 = arith.constant 96 : index
      %199 = vector.load %arg13[%c0_89, %c96_90] : memref<8x256xf32, #tpu.memory_space<vmem>>, vector<8x32xf32>
      %c27 = arith.constant 27 : index
      %200 = memref.load %arg6[%c27] : memref<32xf32, #tpu.memory_space<smem>>
      %201 = vector.broadcast %200 : f32 to vector<8x32xf32>
      %202 = arith.mulf %199, %201 : vector<8x32xf32>
      %203 = arith.addf %198, %202 : vector<8x32xf32>
      %c0_91 = arith.constant 0 : index
      %c128_92 = arith.constant 128 : index
      %204 = vector.load %arg13[%c0_91, %c128_92] : memref<8x256xf32, #tpu.memory_space<vmem>>, vector<8x32xf32>
      %c28 = arith.constant 28 : index
      %205 = memref.load %arg6[%c28] : memref<32xf32, #tpu.memory_space<smem>>
      %206 = vector.broadcast %205 : f32 to vector<8x32xf32>
      %207 = arith.mulf %204, %206 : vector<8x32xf32>
      %208 = arith.addf %203, %207 : vector<8x32xf32>
      %c0_93 = arith.constant 0 : index
      %c160_94 = arith.constant 160 : index
      %209 = vector.load %arg13[%c0_93, %c160_94] : memref<8x256xf32, #tpu.memory_space<vmem>>, vector<8x32xf32>
      %c29 = arith.constant 29 : index
      %210 = memref.load %arg6[%c29] : memref<32xf32, #tpu.memory_space<smem>>
      %211 = vector.broadcast %210 : f32 to vector<8x32xf32>
      %212 = arith.mulf %209, %211 : vector<8x32xf32>
      %213 = arith.addf %208, %212 : vector<8x32xf32>
      %c0_95 = arith.constant 0 : index
      %c192_96 = arith.constant 192 : index
      %214 = vector.load %arg13[%c0_95, %c192_96] : memref<8x256xf32, #tpu.memory_space<vmem>>, vector<8x32xf32>
      %c30 = arith.constant 30 : index
      %215 = memref.load %arg6[%c30] : memref<32xf32, #tpu.memory_space<smem>>
      %216 = vector.broadcast %215 : f32 to vector<8x32xf32>
      %217 = arith.mulf %214, %216 : vector<8x32xf32>
      %218 = arith.addf %213, %217 : vector<8x32xf32>
      %c0_97 = arith.constant 0 : index
      %c224_98 = arith.constant 224 : index
      %219 = vector.load %arg13[%c0_97, %c224_98] : memref<8x256xf32, #tpu.memory_space<vmem>>, vector<8x32xf32>
      %c31 = arith.constant 31 : index
      %220 = memref.load %arg6[%c31] : memref<32xf32, #tpu.memory_space<smem>>
      %221 = vector.broadcast %220 : f32 to vector<8x32xf32>
      %222 = arith.mulf %219, %221 : vector<8x32xf32>
      %223 = arith.addf %218, %222 : vector<8x32xf32>
      %c3_99 = arith.constant 3 : index
      %224 = memref.load %arg7[%c3_99] : memref<4xf32, #tpu.memory_space<smem>>
      %225 = vector.broadcast %224 : f32 to vector<8x32xf32>
      %226 = arith.addf %223, %225 : vector<8x32xf32>
      %c0_100 = arith.constant 0 : index
      %c3_101 = arith.constant 3 : index
      %c0_102 = arith.constant 0 : index
      %c0_103 = arith.constant 0 : index
      %227 = vector.load %arg8[%c0_100, %c3_101, %c0_102, %c0_103] : memref<1x4x8x32xf32, #tpu.memory_space<vmem>>, vector<1x1x8x32xf32>
      %228 = vector.shape_cast %227 : vector<1x1x8x32xf32> to vector<8x32xf32>
      %229 = vector.shape_cast %226 : vector<8x32xf32> to vector<1x1x8x32xf32>
      tpu.vector_store %arg8[%c0_100, %c3_101, %c0_102, %c0_103], %229 {strides = array<i32>} : memref<1x4x8x32xf32, #tpu.memory_space<vmem>>, vector<1x1x8x32xf32>,
    } else {
    }
    return
  }
  func.func @transform_0(%arg0: i32, %arg1: i32, %arg2: i32) -> (i32, i32, i32) {
    %c0_i32 = arith.constant 0 : i32
    %c0_i32_0 = arith.constant 0 : i32
    %c0_i32_1 = arith.constant 0 : i32
    return %arg0, %c0_i32, %c0_i32_0 : i32, i32, i32
  }
  func.func @transform_1(%arg0: i32, %arg1: i32, %arg2: i32) -> (i32, i32) {
    %c0_i32 = arith.constant 0 : i32
    %c0_i32_0 = arith.constant 0 : i32
    %c0_i32_1 = arith.constant 0 : i32
    return %c0_i32, %c0_i32_0 : i32, i32
  }
  func.func @transform_2(%arg0: i32, %arg1: i32, %arg2: i32) -> (i32, i32) {
    %c0_i32 = arith.constant 0 : i32
    %c0_i32_0 = arith.constant 0 : i32
    %c0_i32_1 = arith.constant 0 : i32
    return %c0_i32, %c0_i32_0 : i32, i32
  }
  func.func @transform_3(%arg0: i32, %arg1: i32, %arg2: i32) -> i32 {
    %c0_i32 = arith.constant 0 : i32
    %c0_i32_0 = arith.constant 0 : i32
    return %c0_i32 : i32
  }
  func.func @transform_4(%arg0: i32, %arg1: i32, %arg2: i32) -> i32 {
    %c0_i32 = arith.constant 0 : i32
    %c0_i32_0 = arith.constant 0 : i32
    return %c0_i32 : i32
  }
  func.func @transform_5(%arg0: i32, %arg1: i32, %arg2: i32) -> (i32, i32, i32, i32) {
    %c0_i32 = arith.constant 0 : i32
    %c0_i32_0 = arith.constant 0 : i32
    %c0_i32_1 = arith.constant 0 : i32
    %c0_i32_2 = arith.constant 0 : i32
    return %arg0, %c0_i32, %c0_i32_0, %c0_i32_1 : i32, i32, i32, i32
  }
}

</mosaic_0001>

<bundles_post_ra>
// kernel: tpu_custom_call.1
= control target key start
LH: loop header
LB: loop body
LE: loop exit
PB: predicated region body
PF: predicated region fallthrough
CT: control target
= control target key end

     0   :  { %10 = vsyncpa [#allocation9], 0  ;;  %s2063_s0 = inlined_call_operand.vmem [shape: f32[2,4,256], index: 0, kind: input, shape index: {}]   ;;  %s2064_s1 = inlined_call_operand.vmem [shape: f32[40,4], index: 1, kind: input, shape index: {}]   ;;  %s2065_s2 = inlined_call_operand.vmem [shape: f32[40,1], index: 2, kind: input, shape index: {}]   ;;  %s2066_s3 = inlined_call_operand.vmem [shape: f32[32], index: 3, kind: input, shape index: {}]   ;;  %s2067_s4 = inlined_call_operand.vmem [shape: f32[4], index: 4, kind: input, shape index: {}]   ;;  %s2068_s5 = inlined_call_operand.hbm [shape: f32[2,4,8,32], index: 5, kind: output, shape index: {}]  }
   0x1   :  { %11 = vsyncpa [#allocation11], 0 }
   0x2   :  { %12 = vsyncpa [#allocation8], 0 }
   0x3   :  { %14 = vsyncpa [#allocation8 + $0x1], 0  ;;  %s1696_s18 = smov 0   ;;  %s1698_s19 = smov 0  }
   0x4   :  { %s1700_s20 = smov 0   ;;  %s1702_s21 = smov 0  }
   0x5   :  { %s1704_s22 = smov 0   ;;  %s1706_s23 = smov 0  }
   0x6   :  { %s1708_s24 = smov 0   ;;  %s1710_s25 = smov 0  }
   0x7   :  { %s1712_s26 = smov 0   ;;  %s1714_s27 = smov 0  }
   0x8 LB: > { %2074 = sst [smem:[#allocation16_spill]] %s1642_s25  ;;  %s1193_s28 = sadd.s32 4294967295, %s1650_s27   ;;  %s1650_s27 = sphi %s1714_s27, %s20_s27   ;;  %s1646_s26 = sphi %s1712_s26, %s2095_s26   ;;  %s1642_s25 = sphi %s1710_s25, %s2088_s25   ;;  %s1638_s24 = sphi %s1708_s24, %s2094_s24   ;;  %s1634_s23 = sphi %s1706_s23, %s2093_s23   ;;  %s1630_s22 = sphi %s1704_s22, %s2086_s22   ;;  %s1626_s21 = sphi %s1702_s21, %s2092_s21   ;;  %s1622_s20 = sphi %s1700_s20, %s2091_s20   ;;  %s1618_s19 = sphi %s1698_s19, %s2090_s19   ;;  %s1614_s18 = sphi %s1696_s18, %s2089_s18  }
   0x9   : > { %s1194_s29 = sadd.s32 4294967294, %s1650_s27   ;;  %s32_s30 = sadd.s32 1, %s1638_s24 }
   0xa   : > { %s35_s6 = sadd.s32 1, %s1642_s25  ;;  %p33_p0 = scmp.ge.s32.totalorder %s32_s30, 2 }
   0xb   : > { %s39_s7 = sadd.s32 1, %s1646_s26  ;;  %s156_s8 = sadd.s32 1, %s1622_s20 }
   0xc   : > { %p166_p1 = scmp.ne.s32.totalorder %s1622_s20, %s1618_s19  ;;  %s2097_s30 = smov (%p33_p0, %s32_s30), 0 }
   0xd   : > { %2075 = sst [smem:[#allocation17_spill]] %s2097_s30  ;;  %s2099_s6 = smov (!%p33_p0, %s35_s6), %s1642_s25 }
   0xe   : > { %p167_p2 = scmp.eq.s32.totalorder %s1193_s28, 7  ;;  %p172_p3 = scmp.ne.s32.totalorder %s1618_s19, %s1614_s18 }
   0xf   : > { %p37_p4 = scmp.ge.s32.totalorder %s2099_s6, 2  ;;  %p173_p5 = scmp.eq.s32.totalorder %s1194_s29, 7 }
  0x10   : > { %p1759_p6 = por %p167_p2, %p166_p1  ;;  %p1195_p7 = scmp.ge.s32.totalorder %s1650_s27, 1 }
  0x11   : > { %s2101_s6 = smov (%p37_p4, %s2099_s6), 0  ;;  %s2103_s7 = smov (!%p37_p4, %s39_s7), %s1646_s26 }
  0x12   : > { %s2076_s9 = scalar_select %p1759_p6, 1, 0 }
  0x13   : > { %2077 = sst [smem:[#allocation18_spill]] %s2101_s6  ;;  %p1767_p8 = por %p173_p5, %p172_p3 }
  0x14   : > { %p180_p9 = scmp.lt.s32.totalorder %s1650_s27, 9  ;;  %p41_p10 = scmp.ge.s32.totalorder %s2103_s7, 2 }
  0x15   : > { %s2078_s10 = scalar_select %p1767_p8, 1, 0 }
  0x16   : > { %p1772_p11 = pnand %p1195_p7, %p180_p9  ;;  %p1776_p12 = scmp.eq.s32.totalorder %s1193_s28, 0 }
  0x17   : > { %s2105_s7 = smov (%p41_p10, %s2103_s7), 0  ;;  %s199_s15 = sshll.u32 %s2066_s3, 4  ;;  %s200_s15 = int_to_ptr.vmem [resolvable:$true] %s199_s15 }
  0x18   : > { %s2079_s11 = scalar_select %p1772_p11, 1, 0 }
  0x19   : > { %s2080_s12 = scalar_select %p1776_p12, 1, 0 }
  0x1a   : > { %p1351_p13 = pneg %p1772_p11  ;;  %s153_s16 = ssub.s32 %s1646_s26, %s2105_s7 }
  0x1b   : > { %p154_p0 = scmp.eq.s32.totalorder %s153_s16, 0  ;;  %s210_s6 = sshll.u32 %s2067_s4, 4  ;;  %s211_s6 = int_to_ptr.vmem [resolvable:$true] %s210_s6 }
  0x1c   : > { %p1791_p1 = pnand %p1776_p12, %p1351_p13  ;;  %s1502_s25 = scalar_lea.vmem %s200_s15, 16 }
  0x1d   : > { %s1799_s30 = scalar_select %p154_p0, %s1622_s20, %s156_s8  }
  0x1e   : > { %p1503_p2 = scmp.ne.s32.totalorder %s200_s15, %s1502_s25  ;;  %p1504_p3 = pneg %p1791_p1 }
  0x1f   : > { %p1510_p7 = scmp.lt.s32.totalorder %s200_s15, %s200_s15  ;;  %p1511_p9 = scmp.lt.s32.totalorder %s1502_s25, %s1502_s25 }
  0x20   : > { %p1505_p4 = pnand %p1504_p3, %p1503_p2 }
  0x21   : > { %p1512_p10 = por %p1511_p9, %p1510_p7 }
  0x22   : > { %p1506_p5 = pneg %p1505_p4 }
  0x24   : > { %p1513_p13 = pnand %p1512_p10, %p1506_p5 }
  0x26   : > { %1516 = shalt.err (!%p1513_p13)
}
  0x27   : > { %s1652_s13 = smov [#allocation7]   ;;  %s1517_s14 = scalar_lea.vmem %s211_s6, 16 }
  0x28   : > { %1354 = dma.vmem_to_smem (!%p1791_p1), %s200_s15, 16, %s1652_s13, [#allocation9]  }
  0x29   : > { %p1518_p8 = scmp.ne.s32.totalorder %s211_s6, %s1517_s14  ;;  %p1525_p12 = scmp.lt.s32.totalorder %s211_s6, %s211_s6 }
  0x2a   : > { %p1526_p11 = scmp.lt.s32.totalorder %s1517_s14, %s1517_s14 }
  0x2b   : > { %p1520_p0 = pnand %p1518_p8, %p1504_p3 }
  0x2c   : > { %p1527_p2 = por %p1526_p11, %p1525_p12 }
  0x2d   : > { %p1521_p6 = pneg %p1520_p0 }
  0x2f   : > { %p1528_p4 = pnand %p1527_p2, %p1521_p6 }
  0x31   : > { %1531 = shalt.err (!%p1528_p4)
}
  0x32   : > { %s1653_s8 = smov [#allocation10]   ;;  %p2082_p5 = scmp.ne.s32.totalorder %s2079_s11, 0 }
  0x33   : > { %1357 = dma.vmem_to_smem (!%p1791_p1), %s211_s6, 16, %s1653_s8, [#allocation11]  }
  0x34   : > { %231 = sbr.rel (%p2082_p5) target bundleno = 1162 (0x48a), region = 40  ;;  %p2083_p7 = scmp.ne.s32.totalorder (!%p2082_p5), %s2080_s12, 0 }
  0x3b   : > { %1601 = dma.done.wait (%p2083_p7), [#allocation9], 16  }
  0x3c   : > { %1603 = vsyncadd (%p2083_p7), [#allocation9], 4294967280 }
  0x3d   : > { %1605 = dma.done.wait (%p2083_p7), [#allocation11], 16  }
  0x3e   : > { %1607 = vsyncadd (%p2083_p7), [#allocation11], 4294967280 }
  0x3f   : > { %241 = sfence }
  0x40   : > { %s261_s25 = sand.u32 1, %s1618_s19   ;;  %p264_p6 = scmp.lt.s32.totalorder %s1634_s23, 1 }
  0x41   : > { %s1202_s6 = sshll.u32 %s261_s25, 5  ;;  %p270_p8 = scmp.eq.s32.totalorder %s1630_s22, 0 }
  0x42   : > { %p271_p11 = scmp.eq.s32.totalorder %s1626_s21, 0  ;;  %s1827_s28 = scalar_lea.vmem [#allocation12], %s1202_s6 }
  0x43   : > { %s265_s11 = scalar_select %p264_p6, %s1634_s23, 1 }
  0x44   : > { %p272_p12 = pnand %p271_p11, %p270_p8 }
  0x45   : > { %s1276_s15 = sshll.u32 %s265_s11, 3  ;;  %vm330_vm0 = vcmask (!%p272_p12), 1043456   ;;  %v1654_v2 = vmov (!%p272_p12), 0.0   ;;  %v276_v3 = vld [vmem:[%s2064_s1] sm:$0xff] (!%p272_p12)  ;;  %vm314_vm1 = vcmask (!%p272_p12), 31744   ;;  %v279_v4 = vld [vmem:[%s2064_s1 + $0x18] sm:$0xff] (!%p272_p12) }
  0x46   : > { %s268_s12 = scalar_lea.vmem %s2063_s0, %s1276_s15  ;;  %275 = sbr.rel (%p272_p12) target bundleno = 302 (0x12e), region = 52  ;;  %399 = vmatprep.mubr.f32.mxu0 (!%p272_p12), %v1654_v2  ;;  %417 = vmatprep.mubr.f32.mxu1 (!%p272_p12), %v1654_v2  ;;  %v1655_v5 = vmov (!%p272_p12), 0   ;;  %v282_v6 = vld [vmem:[%s2065_s2] sm:$0xff] (!%p272_p12)  ;;  %v284_v7 = vld [vmem:[%s2065_s2 + $0x10] sm:$0xff] (!%p272_p12)  ;;  %v277_v8 = vld [vmem:[%s2064_s1 + $0x8] sm:$0xff] (!%p272_p12) }
  0x47   : > { %v281_v0 = vld [vmem:[%s268_s12] sm:$0xff] (!%p272_p12)  ;;  %1461 = vset.pattern.permute.xlu0 (!%p272_p12), %v1655_v5  ;;  %1462 = vset.pattern.permute.xlu1 (!%p272_p12), %v1655_v5  ;;  %v283_v10 = vld [vmem:[%s2065_s2 + $0x8] sm:$0xff] (!%p272_p12)  ;;  %v285_v11 = vld [vmem:[%s2065_s2 + $0x18] sm:$0xff] (!%p272_p12) }
  0x48   : > { %v313_v1 = vcombine.high (!%p272_p12), %v281_v0, %v281_v0  ;;  %v280_v9 = vld [vmem:[%s2064_s1 + $0x20] sm:$0xff] (!%p272_p12)  ;;  %289 = vperm.xlu0 (!%p272_p12), %1461, %v282_v6   ;;  %299 = vperm.xlu1 (!%p272_p12), %1462, %v284_v7   ;;  %v278_v12 = vld [vmem:[%s2064_s1 + $0x10] sm:$0xff] (!%p272_p12) }
  0x49   : > { %v286_v13 = vld [vmem:[%s2065_s2 + $0x20] sm:$0xff] (!%p272_p12) }
  0x4a   : > { %1205 = vmatprep.subr.msk.mxu0 (!%p272_p12), %vm330_vm0, %v313_v1  ;;  %1339 = vmatprep.subr.msk.mxu1 (!%p272_p12), %vm330_vm0, %v313_v1 }
  0x4b   : > { %1206 = vmatpush1.msk.msra.mxu0 (!%p272_p12), %vm330_vm0, %v281_v0  ;;  %1340 = vmatpush1.msk.msra.mxu1 (!%p272_p12), %vm330_vm0, %v281_v0 }
  0x4c   : > { %1207 = vmatmul.mubr.msk.f32.vlgmr.msra.gmra.mrb[0].mxu0 (!%p272_p12), %vm314_vm1, %v276_v3  ;;  %1210 = vmatmul.mubr.msk.f32.vlgmr.msra.gmra.mrb[0].mxu1 (!%p272_p12), %vm314_vm1, %v279_v4 }
  0x4d   : > { %405 = vmatprep.mubr.f32.mxu0 %v1654_v2  ;;  %423 = vmatprep.mubr.f32.mxu1 %v1654_v2 }
  0x4e   : > { %294 = vperm.xlu0 %1461, %v283_v10   ;;  %304 = vperm.xlu1 %1462, %v285_v11  }
  0x50   : > { %1208 = vmatmul.mubr.msk.f32.gmra.mrb[2].mxu0 %vm314_vm1, %v277_v8  ;;  %1211 = vmatmul.mubr.msk.f32.gmra.mrb[2].mxu1 %vm314_vm1, %v280_v9 }
  0x51   : > { %411 = vmatprep.mubr.f32.mxu0 %v1654_v2 }
  0x52   : > { %309 = vperm.xlu0 %1461, %v286_v13  }
  0x54   : > { %1209 = vmatmul.mubr.msk.f32.gmra.mrb[4].mxu0 %vm314_vm1, %v278_v12 }
  0xc7   : > { %v290_v14 = vpop.permute.xlu0 %289  ;;  %v300_v15 = vpop.permute.xlu1 %299 }
  0xcd   : > { %v295_v16 = vpop.permute.xlu0 %294  ;;  %v305_v17 = vpop.permute.xlu1 %304 }
  0xd1   : > { %v310_v26 = vpop.permute.xlu0 %309 }
 0x11f   : > { %v401_v18 = vpop.f32.mrb[0].mxu0  ;;  %v419_v19 = vpop.f32.mrb[0].mxu1 }
 0x120   : > { %v402_v20 = vadd.f32 %v401_v18, %v290_v14  ;;  %v403_v21 = vpop.f32.mrb[1].mxu0  ;;  %v421_v22 = vpop.f32.mrb[1].mxu1  ;;  %v420_v23 = vadd.f32 %v419_v19, %v305_v17 }
 0x121   : > { %v404_v24 = vadd.f32 %v403_v21, %v290_v14  ;;  %v422_v25 = vadd.f32 %v421_v22, %v305_v17 }
 0x123   : > { %v1277_v27 = vpack.c.bf16 %v404_v24, %v402_v20  ;;  %v1280_v28 = vpack.c.bf16 %v422_v25, %v420_v23  ;;  %v407_v29 = vpop.f32.mrb[2].mxu0  ;;  %v425_v30 = vpop.f32.mrb[2].mxu1 }
 0x124   : > { %v408_v31 = vadd.f32 %v407_v29, %v295_v16  ;;  %v426_v32 = vadd.f32 %v425_v30, %v310_v26  ;;  %v409_v33 = vpop.f32.mrb[3].mxu0  ;;  %v427_v34 = vpop.f32.mrb[3].mxu1 }
 0x125   : > { %462 = vst [vmem:[#allocation2] sm:$0xff] %v1277_v27  ;;  %465 = vst [vmem:[#allocation2 + $0x18] sm:$0xff] %v1280_v28  ;;  %v410_v35 = vadd.f32 %v409_v33, %v295_v16  ;;  %v428_v36 = vadd.f32 %v427_v34, %v310_v26 }
 0x127   : > { %v1278_v37 = vpack.c.bf16 %v410_v35, %v408_v31  ;;  %v1281_v38 = vpack.c.bf16 %v428_v36, %v426_v32  ;;  %v413_v39 = vpop.f32.mrb[4].mxu0 }
 0x128   : > { %v414_v40 = vadd.f32 %v413_v39, %v300_v15  ;;  %v415_v41 = vpop.f32.mrb[5].mxu0 }
 0x129   : > { %463 = vst [vmem:[#allocation2 + $0x8] sm:$0xff] %v1278_v37  ;;  %466 = vst [vmem:[#allocation2 + $0x20] sm:$0xff] %v1281_v38  ;;  %v416_v42 = vadd.f32 %v415_v41, %v300_v15 }
 0x12b   : > { %v1279_v43 = vpack.c.bf16 %v416_v42, %v414_v40 }
 0x12d   : > { %464 = vst [vmem:[#allocation2 + $0x10] sm:$0xff] %v1279_v43 }
 0x12e PF: > { %p1217_p1 = scmp.ne.s32.totalorder %s1626_s21, 0 }
 0x12f   : > { %v1656_v44 = vmov (!%p1217_p1), -inf   ;;  %v1657_v45 = vmov (!%p1217_p1), 0.0  }
 0x130   : > { %469 = sbr.rel (%p1217_p1) target bundleno = 311 (0x137), region = 56  ;;  %470 = vst [vmem:[#allocation3] sm:$0x1] (!%p1217_p1), %v1656_v44  ;;  %471 = vst [vmem:[#allocation4] sm:$0x1] (!%p1217_p1), %v1657_v45 }
 0x131   : > { %472 = vst [vmem:[#allocation5] sm:$0xff] (!%p1217_p1), %v1657_v45 }
 0x137 PF: > { %s1219_s29 = sshll.u32 %s1626_s21, 7  ;;  %s1218_s13 = sshll.u32 %s1630_s22, 7  ;;  %vm516_vm2 = vcmask 130048   ;;  %v1658_v56 = vmov 0.0   ;;  %vm1659_vm3 = vmmov 0   ;;  %v665_v26 = vlaneseq }
 0x138   : > { %s481_s14 = sshra.s32 %s1219_s29, 7  ;;  %s1867_s8 = sshra.s32 %s1218_s13, 7  ;;  %1319 = vmatprep.subr.bf16.mxu1 %v1658_v56  ;;  %1335 = vmatprep.mubr.msk.bf16.mxu1 %vm1659_vm3, %v1658_v56  ;;  %v638_v31 = vld [vmem:[#allocation3] sm:$0x1] }
 0x139   : > { %s1221_s6 = sshll.u32 %s481_s14, 2  ;;  %s1220_s11 = sshll.u32 %s1867_s8, 2  ;;  %v666_v29 = vshrl.u32 %v665_v26, 7 }
 0x13a   : > { %s1870_s15 = scalar_lea.vmem [#allocation2], %s1221_s6  ;;  %s478_s16 = scalar_lea.vmem [#allocation2], %s1220_s11 }
 0x13b   : > { %v1464_v46 = vld [vmem:[%s1870_s15 + $0x10] ss:$8 sps:$4 sm:$0xff]   ;;  %v1465_v47 = vld [vmem:[%s478_s16] ss:$8 sps:$4 sm:$0xff]   ;;  %v1901_v33 = vsub.s32 0, %v666_v29  ;;  %p802_p3 = scmp.eq.s32.totalorder %s1626_s21, 1 }
 0x13c   : > { %494 = vxpose.xlu0.c.b16.start.end [1/1] (short) %v1464_v46, 128  ;;  %1301 = vmatprep.subr.bf16.mxu0 %v1465_v47  ;;  %p1232_p9 = scmp.ne.s32.totalorder %s1626_s21, 1 }
 0x13d   : > { %1302 = vmatpush3.bf16.msra.mxu0 %v1465_v47  ;;  %s1233_s17 = sshll.u32 (!%p1232_p9), %s1867_s8, 3 }
 0x13e   : > { %s817_s12 = scalar_lea.vmem (!%p1232_p9), [#allocation6], %s1233_s17 }
 0x1a2   : > { %v502_v48 = vpop.trf.xlu0 }
 0x1a3   : > { %1303 = vmatprep.mubr.msk.bf16.mxu0 %vm516_vm2, %v502_v48 }
 0x1a6   : > { %v503_v49 = vpop.trf.xlu0 }
 0x1a7   : > { %1304 = vmatmul.mubr.msk.bf16.vlgmr.msra.gmra.mrb[0].mxu0 %vm516_vm2, %v503_v49 }
 0x1aa   : > { %v504_v50 = vpop.trf.xlu0 }
 0x1ab   : > { %1307 = vmatprep.mubr.msk.bf16.mxu0 %vm516_vm2, %v504_v50 }
 0x1ae   : > { %v505_v51 = vpop.trf.xlu0 }
 0x1af   : > { %1308 = vmatmul.mubr.msk.bf16.gmra.mrb[4].mxu0 %vm516_vm2, %v505_v51 }
 0x1b2   : > { %v506_v52 = vpop.trf.xlu0 }
 0x1b3   : > { %1311 = vmatprep.mubr.msk.bf16.mxu0 %vm516_vm2, %v506_v52 }
 0x1b6   : > { %v507_v53 = vpop.trf.xlu0 }
 0x1b7   : > { %1312 = vmatmul.mubr.msk.bf16.gmra.mrb[8].mxu0 %vm516_vm2, %v507_v53 }
 0x1ba   : > { %v508_v54 = vpop.trf.xlu0 }
 0x1bb   : > { %1315 = vmatprep.mubr.msk.bf16.mxu0 %vm516_vm2, %v508_v54 }
 0x1be   : > { %v509_v55 = vpop.trf.xlu0 }
 0x1bf   : > { %1316 = vmatmul.mubr.msk.bf16.gmra.mrb[12].mxu0 %vm516_vm2, %v509_v55 }
 0x27a   : > { %v1305_v57 = vpop.f32.mrb[0].mxu0 }
 0x27b   : > { %v575_v58 = vpop.f32.mrb[1].mxu0 }
 0x27c   : > { %v1306_v59 = vpop.f32.mrb[2].mxu0 }
 0x27d   : > { %v578_v60 = vpop.f32.mrb[3].mxu0 }
 0x282   : > { %v1883_v61 = vpop.f32.mrb[4].mxu0 }
 0x283   : > { %v641_v62 = vmax.f32 %v1305_v57, %v1883_v61  ;;  %v591_v63 = vpop.f32.mrb[5].mxu0 }
 0x284   : > { %v639_v0 = vmax.f32 %v575_v58, %v591_v63  ;;  %v1886_v1 = vpop.f32.mrb[6].mxu0 }
 0x285   : > { %v642_v2 = vmax.f32 %v1306_v59, %v1886_v1  ;;  %v594_v3 = vpop.f32.mrb[7].mxu0 }
 0x286   : > { %v640_v4 = vmax.f32 %v578_v60, %v594_v3 }
 0x28a   : > { %v1889_v5 = vpop.f32.mrb[8].mxu0 }
 0x28b   : > { %v645_v6 = vmax.f32 %v641_v62, %v1889_v5  ;;  %v607_v7 = vpop.f32.mrb[9].mxu0 }
 0x28c   : > { %v643_v8 = vmax.f32 %v639_v0, %v607_v7  ;;  %v1892_v9 = vpop.f32.mrb[10].mxu0 }
 0x28d   : > { %v646_v10 = vmax.f32 %v642_v2, %v1892_v9  ;;  %v610_v11 = vpop.f32.mrb[11].mxu0 }
 0x28e   : > { %v644_v12 = vmax.f32 %v640_v4, %v610_v11 }
 0x292   : > { %v1895_v13 = vpop.f32.mrb[12].mxu0 }
 0x293   : > { %v649_v14 = vmax.f32 %v645_v6, %v1895_v13  ;;  %v623_v15 = vpop.f32.mrb[13].mxu0 }
 0x294   : > { %v647_v16 = vmax.f32 %v643_v8, %v623_v15  ;;  %v1898_v17 = vpop.f32.mrb[14].mxu0 }
 0x295   : > { %v650_v18 = vmax.f32 %v646_v10, %v1898_v17  ;;  %v626_v19 = vpop.f32.mrb[15].mxu0 }
 0x296   : > { %v648_v20 = vmax.f32 %v644_v12, %v626_v19 }
 0x297   : > { %v652_v21 = vmax.f32 %v649_v14, %v650_v18 }
 0x298   : > { %v651_v22 = vmax.f32 %v647_v16, %v648_v20 }
 0x29a   : > { %v653_v23 = vmax.f32 %v651_v22, %v652_v21 }
 0x29c   : > { %v654_v24 = vrot.slane %v653_v23, 4 }
 0x29e   : > { %v655_v25 = vmax.f32 %v653_v23, %v654_v24 }
 0x2a0   : > { %v656_v27 = vrot.slane %v655_v25, 2 }
 0x2a2   : > { %v657_v28 = vmax.f32 %v655_v25, %v656_v27 }
 0x2a4   : > { %v658_v30 = vrot.slane %v657_v28, 1 }
 0x2a6   : > { %v659_v32 = vmax.f32 %v657_v28, %v658_v30 }
 0x2a8   : > { %v660_v34 = vmax.f32 %v638_v31, %v659_v32 }
 0x2aa   : > { %v668_v35 = vrot.slane %v660_v34, %v1901_v33  ;;  %801 = vst [vmem:[#allocation3] sm:$0x1] %v660_v34  ;;  %v661_v2 = vsub.f32 %v638_v31, %v660_v34 }
 0x2ac   : > { %v670_v36 = vsub.f32 %v575_v58, %v668_v35  ;;  %v671_v37 = vsub.f32 %v578_v60, %v668_v35  ;;  %v672_v38 = vsub.f32 %v1305_v57, %v668_v35  ;;  %v673_v39 = vsub.f32 %v1306_v59, %v668_v35 }
 0x2ad   : > { %v674_v40 = vsub.f32 %v591_v63, %v668_v35  ;;  %v675_v41 = vsub.f32 %v594_v3, %v668_v35  ;;  %v676_v42 = vsub.f32 %v1883_v61, %v668_v35  ;;  %v677_v43 = vsub.f32 %v1886_v1, %v668_v35 }
 0x2ae   : > { %v678_v44 = vsub.f32 %v607_v7, %v668_v35  ;;  %v679_v45 = vsub.f32 %v610_v11, %v668_v35  ;;  %v680_v46 = vsub.f32 %v1889_v5, %v668_v35  ;;  %v681_v47 = vsub.f32 %v1892_v9, %v668_v35 }
 0x2af   : > { %v682_v48 = vsub.f32 %v623_v15, %v668_v35  ;;  %v683_v49 = vsub.f32 %v626_v19, %v668_v35  ;;  %v684_v50 = vsub.f32 %v1895_v13, %v668_v35  ;;  %v686_v51 = vmul.f32 1.442695, %v670_v36 }
 0x2b0   : > { %v688_v52 = vmul.f32 1.442695, %v671_v37  ;;  %v690_v53 = vmul.f32 1.442695, %v672_v38  ;;  %v692_v54 = vmul.f32 1.442695, %v673_v39  ;;  %v685_v55 = vsub.f32 %v1898_v17, %v668_v35 }
 0x2b1   : > { %1466 = vpow2.f32 %v686_v51  ;;  %v694_v57 = vmul.f32 1.442695, %v674_v40  ;;  %v696_v58 = vmul.f32 1.442695, %v675_v41  ;;  %v698_v59 = vmul.f32 1.442695, %v676_v42 }
 0x2b2   : > { %1468 = vpow2.f32 %v688_v52  ;;  %v700_v60 = vmul.f32 1.442695, %v677_v43  ;;  %v702_v61 = vmul.f32 1.442695, %v678_v44  ;;  %v704_v62 = vmul.f32 1.442695, %v679_v45 }
 0x2b3   : > { %1470 = vpow2.f32 %v690_v53  ;;  %v706_v63 = vmul.f32 1.442695, %v680_v46  ;;  %v708_v0 = vmul.f32 1.442695, %v681_v47  ;;  %v710_v1 = vmul.f32 1.442695, %v682_v48 }
 0x2b4   : > { %1472 = vpow2.f32 %v692_v54  ;;  %v712_v3 = vmul.f32 1.442695, %v683_v49  ;;  %v714_v5 = vmul.f32 1.442695, %v684_v50  ;;  %v716_v7 = vmul.f32 1.442695, %v685_v55 }
 0x2b5   : > { %1474 = vpow2.f32 %v694_v57  ;;  %v662_v11 = vmul.f32 1.442695, %v661_v2  ;;  %v487_v50 = vld [vmem:[%s1870_s15 + $0x20] sm:$0xf]  ;;  %v718_v54 = vld [vmem:[#allocation4] sm:$0x1] }
 0x2b6   : > { %1476 = vpow2.f32 %v696_v58 }
 0x2b7   : > { %1478 = vpow2.f32 %v698_v59 }
 0x2b8   : > { %1480 = vpow2.f32 %v700_v60  ;;  %v791_v60 = vld [vmem:[#allocation5] sm:$0xff] }
 0x2b9   : > { %1482 = vpow2.f32 %v702_v61 }
 0x2ba   : > { %1484 = vpow2.f32 %v704_v62 }
 0x2bb   : > { %v1467_v4 = vpop.eup %1466  ;;  %1486 = vpow2.f32 %v706_v63 }
 0x2bc   : > { %v1469_v6 = vpop.eup %1468  ;;  %1488 = vpow2.f32 %v708_v0 }
 0x2bd   : > { %v1471_v8 = vpop.eup %1470  ;;  %1490 = vpow2.f32 %v710_v1  ;;  %v720_v9 = vadd.f32 %v1469_v6, %v1467_v4  ;;  %v743_v10 = vpack.c.bf16 %v1469_v6, %v1467_v4 }
 0x2be   : > { %v1473_v12 = vpop.eup %1472  ;;  %1492 = vpow2.f32 %v712_v3 }
 0x2bf   : > { %v1475_v13 = vpop.eup %1474  ;;  %1494 = vpow2.f32 %v714_v5  ;;  %v721_v14 = vadd.f32 %v1471_v8, %v720_v9  ;;  %1320 = vmatpush3.bf16.msra.mxu1 %v743_v10  ;;  %v744_v15 = vpack.c.bf16 %v1473_v12, %v1471_v8 }
 0x2c0   : > { %v1477_v16 = vpop.eup %1476  ;;  %1321 = vmatprep.subr.bf16.mxu1 %v1658_v56  ;;  %1496 = vpow2.f32 %v716_v7 }
 0x2c1   : > { %v1479_v17 = vpop.eup %1478  ;;  %v722_v18 = vadd.f32 %v1473_v12, %v721_v14  ;;  %v745_v19 = vpack.c.bf16 %v1477_v16, %v1475_v13  ;;  %1498 = vpow2.f32 %v662_v11 }
 0x2c2   : > { %v1481_v20 = vpop.eup %1480 }
 0x2c3   : > { %v1483_v21 = vpop.eup %1482  ;;  %v723_v22 = vadd.f32 %v1475_v13, %v722_v18  ;;  %1322 = vmatpush3.bf16.msra.mxu1 %v744_v15  ;;  %v746_v23 = vpack.c.bf16 %v1481_v20, %v1479_v17 }
 0x2c4   : > { %v1485_v24 = vpop.eup %1484  ;;  %1323 = vmatprep.subr.bf16.mxu1 %v1658_v56 }
 0x2c5   : > { %v1487_v25 = vpop.eup %1486  ;;  %v724_v26 = vadd.f32 %v1477_v16, %v723_v22  ;;  %v747_v27 = vpack.c.bf16 %v1485_v24, %v1483_v21 }
 0x2c6   : > { %v1489_v28 = vpop.eup %1488 }
 0x2c7   : > { %v1491_v29 = vpop.eup %1490  ;;  %v725_v30 = vadd.f32 %v1479_v17, %v724_v26  ;;  %1324 = vmatpush3.bf16.msra.mxu1 %v745_v19  ;;  %v748_v31 = vpack.c.bf16 %v1489_v28, %v1487_v25 }
 0x2c8   : > { %v1493_v32 = vpop.eup %1492  ;;  %1325 = vmatprep.subr.bf16.mxu1 %v1658_v56 }
 0x2c9   : > { %v1495_v34 = vpop.eup %1494  ;;  %v726_v35 = vadd.f32 %v1481_v20, %v725_v30  ;;  %v749_v36 = vpack.c.bf16 %v1493_v32, %v1491_v29 }
 0x2ca   : > { %v1497_v37 = vpop.eup %1496 }
 0x2cb   : > { %v1499_v38 = vpop.eup %1498  ;;  %v727_v39 = vadd.f32 %v1483_v21, %v726_v35  ;;  %1326 = vmatpush3.bf16.msra.mxu1 %v746_v23  ;;  %v750_v40 = vpack.c.bf16 %v1497_v37, %v1495_v34 }
 0x2cc   : > { %1327 = vmatprep.subr.bf16.mxu1 %v1658_v56  ;;  %v796_v41 = vrot.slane %v1499_v38, %v1901_v33  ;;  %v719_v58 = vmul.f32 %v1499_v38, %v718_v54 }
 0x2cd   : > { %v728_v42 = vadd.f32 %v1485_v24, %v727_v39 }
 0x2ce   : > { %v798_v61 = vmul.f32 %v796_v41, %v791_v60 }
 0x2cf   : > { %v729_v43 = vadd.f32 %v1487_v25, %v728_v42  ;;  %1328 = vmatpush3.bf16.msra.mxu1 %v747_v27 }
 0x2d0   : > { %1329 = vmatprep.subr.bf16.mxu1 %v1658_v56 }
 0x2d1   : > { %v730_v44 = vadd.f32 %v1489_v28, %v729_v43 }
 0x2d3   : > { %v731_v45 = vadd.f32 %v1491_v29, %v730_v44  ;;  %1330 = vmatpush3.bf16.msra.mxu1 %v748_v31 }
 0x2d4   : > { %1331 = vmatprep.subr.bf16.mxu1 %v1658_v56 }
 0x2d5   : > { %v732_v46 = vadd.f32 %v1493_v32, %v731_v45 }
 0x2d7   : > { %v733_v47 = vadd.f32 %v1495_v34, %v732_v46  ;;  %1332 = vmatpush3.bf16.msra.mxu1 %v749_v36 }
 0x2d8   : > { %1333 = vmatprep.subr.bf16.mxu1 %v1658_v56 }
 0x2d9   : > { %v734_v48 = vadd.f32 %v1497_v37, %v733_v47 }
 0x2db   : > { %v735_v49 = vrot.slane %v734_v48, 4  ;;  %1334 = vmatpush3.bf16.msra.mxu1 %v750_v40 }
 0x2dd   : > { %v736_v51 = vadd.f32 %v735_v49, %v734_v48 }
 0x2de   : > { %1336 = vmatmul.mubr.bf16.vlgmr.msra.gmra.mrb[0].mxu1 %v487_v50 }
 0x2df   : > { %v737_v52 = vrot.slane %v736_v51, 2 }
 0x2e1   : > { %v738_v53 = vadd.f32 %v737_v52, %v736_v51 }
 0x2e3   : > { %v739_v55 = vrot.slane %v738_v53, 1 }
 0x2e5   : > { %v740_v57 = vadd.f32 %v739_v55, %v738_v53 }
 0x2e7   : > { %v741_v59 = vadd.f32 %v740_v57, %v719_v58 }
 0x2e9   : > { %742 = vst [vmem:[#allocation4] sm:$0x1] %v741_v59 }
 0x2f0   : > { %v806_v2 = vld [vmem:[#allocation4] sm:$0x1] (!%p1232_p9) }
 0x2f1   : > { %1500 = vrcp.f32 (!%p1232_p9), %v806_v2 }
 0x2fb   : > { %v1501_v3 = vpop.eup (!%p1232_p9), %1500 }
 0x2fc   : > { %v813_v5 = vrot.slane (!%p1232_p9), %v1501_v3, %v1901_v33 }
 0x3ae   : > { %805 = sbr.rel (%p1232_p9) target bundleno = 959 (0x3bf), region = 60 }
 0x3b1   : > { %v785_v62 = vpop.f32.mrb[0].mxu1 }
 0x3b2   : > { %v799_v63 = vadd.f32 %v798_v61, %v785_v62  ;;  %v1337_v56 = vpop.f32.mrb[1].mxu1 }
 0x3b3   : > { %v788_v0 = vpop.f32.mrb[2].mxu1 }
 0x3b4   : > { %800 = vst [vmem:[#allocation5] sm:$0xff] %v799_v63  ;;  %v1338_v1 = vpop.f32.mrb[3].mxu1 }
 0x3bb   : > { %v808_v4 = vld [vmem:[#allocation5] sm:$0xff] }
 0x3bc   : > { %v815_v6 = vmul.f32 %v813_v5, %v808_v4 }
 0x3be   : > { %818 = vst [vmem:[%s817_s12] sm:$0xff] %v815_v6 }
 0x3bf PF: > { %p819_p10 = scmp.eq.s32.totalorder %s1630_s22, 1 }
 0x3c1   : > { %p820_p13 = pnand %p819_p10, %p802_p3 }
 0x3c2   : > { %s1252_s29 = sld [smem:[#allocation7 + $0x11]] (!%p820_p13)  ;;  %s1243_s11 = sld [smem:[#allocation7 + $0xa]] (!%p820_p13)  ;;  %vm884_vm4 = vcmask (!%p820_p13), 261120  }
 0x3c3   : > { %823 = sbr.rel (%p820_p13) target bundleno = 1136 (0x470), region = 64  ;;  %s1234_s13 = sld [smem:[#allocation7 + $0x1]] (!%p820_p13) }
 0x3c4   : > { %s1262_s14 = sld [smem:[#allocation7 + $0x19]] (!%p820_p13)  ;;  %s1235_s8 = sld [smem:[#allocation7 + $0x2]] (!%p820_p13) }
 0x3c5   : > { %s1242_s6 = sld [smem:[#allocation7 + $0x9]] (!%p820_p13)  ;;  %v1926_v7 = vld [vmem:[#allocation6] sm:$0xff] (!%p820_p13)  ;;  %s1263_s15 = sld [smem:[#allocation7 + $0x1a]] (!%p820_p13)  ;;  %v1950_v31 = vld [vmem:[#allocation6 + $0x8] sm:$0xff] (!%p820_p13) }
 0x3c6   : > { %s1253_s16 = sld [smem:[#allocation7 + $0x12]] (!%p820_p13)  ;;  %s1660_s21 = smov (!%p820_p13), 96  }
 0x3c7   : > { %s1244_s22 = sld [smem:[#allocation7 + $0xb]] (!%p820_p13) }
 0x3c8   : > { %v953_v8 = vstv (!%p820_p13), %s1252_s29  ;;  %v899_v15 = vstv (!%p820_p13), %s1243_s11  ;;  %s1236_s17 = sld [smem:[#allocation7 + $0x3]] (!%p820_p13)  ;;  %s1266_s11 = sld [smem:[#allocation7 + $0x1d]] (!%p820_p13) }
 0x3c9   : > { %v954_v33 = vmul.f32 (!%p820_p13), %v953_v8, %v1926_v7  ;;  %v829_v9 = vstv (!%p820_p13), %s1234_s13  ;;  %v900_v17 = vmul.f32 (!%p820_p13), %v1926_v7, %v899_v15  ;;  %s1264_s12 = sld [smem:[#allocation7 + $0x1b]] (!%p820_p13)  ;;  %s1661_s13 = smov (!%p820_p13), 64  }
 0x3ca   : > { %v1015_v10 = vstv %s1262_s14  ;;  %v830_v11 = vmul.f32 %v1926_v7, %v829_v9  ;;  %v837_v16 = vstv %s1235_s8  ;;  %s1254_s29 = sld [smem:[#allocation7 + $0x13]]  ;;  %s1246_s14 = sld [smem:[#allocation7 + $0xd]] }
 0x3cb   : > { %v891_v12 = vstv %s1242_s6  ;;  %956 = vrot.lane.b32.xlu1 %v954_v33, %s1660_s21  ;;  %v1016_v13 = vmul.f32 %v1015_v10, %v1926_v7  ;;  %v838_v18 = vmul.f32 %v1926_v7, %v837_v16  ;;  %v1023_v19 = vstv %s1263_s15  ;;  %s1238_s6 = sld [smem:[#allocation7 + $0x5]]  ;;  %s1662_s15 = smov 32  }
 0x3cc   : > { %832 = vrot.lane.b32.xlu0 %v830_v11, %s1660_s21  ;;  %v892_v14 = vmul.f32 %v1926_v7, %v891_v12  ;;  %v961_v20 = vstv %s1253_s16  ;;  %v1024_v21 = vmul.f32 %v1023_v19, %v1926_v7  ;;  %s1256_s8 = sld [smem:[#allocation7 + $0x15]]  ;;  %s1247_s16 = sld [smem:[#allocation7 + $0xe]] }
 0x3cd   : > { %v962_v22 = vmul.f32 %v961_v20, %v1926_v7  ;;  %v907_v23 = vstv %s1244_s22  ;;  %s1239_s22 = sld [smem:[#allocation7 + $0x6]] }
 0x3ce   : > { %v845_v24 = vstv %s1236_s17  ;;  %v908_v25 = vmul.f32 %v1926_v7, %v907_v23  ;;  %v1044_v37 = vstv %s1266_s11  ;;  %s1267_s17 = sld [smem:[#allocation7 + $0x1e]]  ;;  %s1258_s11 = sld [smem:[#allocation7 + $0x17]] }
 0x3cf   : > { %1018 = vrot.lane.b32.xlu1 %v1016_v13, %s1660_s21  ;;  %v846_v26 = vmul.f32 %v1926_v7, %v845_v24  ;;  %v1031_v27 = vstv %s1264_s12  ;;  %s1257_s12 = sld [smem:[#allocation7 + $0x16]]  ;;  %v1045_v39 = vmul.f32 %v1044_v37, %v1950_v31 }
 0x3d0   : > { %894 = vrot.lane.b32.xlu0 %v892_v14, %s1660_s21  ;;  %v969_v28 = vstv %s1254_s29  ;;  %v1032_v29 = vmul.f32 %v1031_v27, %v1926_v7  ;;  %v920_v32 = vstv %s1246_s14  ;;  %s1248_s29 = sld [smem:[#allocation7 + $0xf]] }
 0x3d1   : > { %v970_v30 = vmul.f32 %v969_v28, %v1926_v7  ;;  %v858_v34 = vstv %s1238_s6  ;;  %v921_v35 = vmul.f32 %v920_v32, %v1950_v31  ;;  %s1240_s14 = sld [smem:[#allocation7 + $0x7]] }
 0x3d2   : > { %v859_v36 = vmul.f32 %v1950_v31, %v858_v34  ;;  %v982_v38 = vstv %s1256_s8  ;;  %v928_v41 = vstv %s1247_s16  ;;  %s1268_s6 = sld [smem:[#allocation7 + $0x1f]]  ;;  %s825_s8 = sld [smem:[#allocation7]] }
 0x3d3   : > { %902 = vrot.lane.b32.xlu1 %v900_v17, %s1661_s13  ;;  %v983_v40 = vmul.f32 %v982_v38, %v1950_v31  ;;  %v866_v42 = vstv %s1239_s22  ;;  %v929_v43 = vmul.f32 %v928_v41, %v1950_v31  ;;  %s1251_s16 = sld [smem:[#allocation7 + $0x10]]  ;;  %s1245_s22 = sld [smem:[#allocation7 + $0xc]] }
 0x3d4   : > { %840 = vrot.lane.b32.xlu0 %v838_v18, %s1661_s13  ;;  %v867_v44 = vmul.f32 %v1950_v31, %v866_v42  ;;  %v1052_v45 = vstv %s1267_s17  ;;  %v998_v54 = vstv %s1258_s11  ;;  %s1237_s17 = sld [smem:[#allocation7 + $0x4]]  ;;  %s1259_s11 = sld [smem:[#allocation10 + $0x2]] }
 0x3d5   : > { %v990_v46 = vstv %s1257_s12  ;;  %v1053_v47 = vmul.f32 %v1052_v45, %v1950_v31  ;;  %v999_v57 = vmul.f32 %v998_v54, %v1950_v31  ;;  %s1265_s12 = sld [smem:[#allocation7 + $0x1c]] }
 0x3d6   : > { %v991_v48 = vmul.f32 %v990_v46, %v1950_v31  ;;  %v936_v49 = vstv %s1248_s29  ;;  %s1255_s29 = sld [smem:[#allocation7 + $0x14]] }
 0x3d7   : > { %1026 = vrot.lane.b32.xlu1 %v1024_v21, %s1661_s13  ;;  %v874_v50 = vstv %s1240_s14  ;;  %v937_v51 = vmul.f32 %v936_v49, %v1950_v31  ;;  %s881_s14 = sld [smem:[#allocation10]] }
 0x3d8   : > { %964 = vrot.lane.b32.xlu0 %v962_v22, %s1661_s13  ;;  %v875_v52 = vmul.f32 %v1950_v31, %v874_v50  ;;  %v1060_v53 = vstv %s1268_s6  ;;  %v826_v63 = vstv %s825_s8  ;;  %s1269_s6 = sld [smem:[#allocation10 + $0x3]] }
 0x3d9   : > { %v1061_v55 = vmul.f32 %v1060_v53, %v1950_v31  ;;  %v827_v2 = vmul.f32 %v1926_v7, %v826_v63  ;;  %v950_v4 = vstv %s1251_s16  ;;  %v916_v6 = vstv %s1245_s22 }
 0x3da   : > { %v854_v10 = vstv %s1237_s17  ;;  %v951_v11 = vmul.f32 %v950_v4, %v1926_v7  ;;  %v917_v14 = vmul.f32 %v916_v6, %v1950_v31 }
 0x3db   : > { %910 = vrot.lane.b32.xlu1 %v908_v25, %s1662_s15  ;;  %v855_v17 = vmul.f32 %v1950_v31, %v854_v10  ;;  %v1040_v18 = vstv %s1265_s12 }
 0x3dc   : > { %848 = vrot.lane.b32.xlu0 %v846_v26, %s1662_s15  ;;  %v978_v22 = vstv %s1255_s29  ;;  %v1041_v27 = vmul.f32 %v1040_v18, %v1950_v31 }
 0x3dd   : > { %v882_v53 = vstv %s881_s14 }
 0x3df   : > { %1034 = vrot.lane.b32.xlu1 %v1032_v29, %s1662_s15 }
 0x3e0   : > { %972 = vrot.lane.b32.xlu0 %v970_v30, %s1662_s15  ;;  %v979_v30 = vmul.f32 %v978_v22, %v1950_v31 }
 0x3e3   : > { %923 = vrot.lane.b32.xlu1 %v921_v35, %s1660_s21 }
 0x3e4   : > { %861 = vrot.lane.b32.xlu0 %v859_v36, %s1660_s21 }
 0x3e7   : > { %1047 = vrot.lane.b32.xlu1 %v1045_v39, %s1660_s21 }
 0x3e8   : > { %985 = vrot.lane.b32.xlu0 %v983_v40, %s1660_s21  ;;  %s1241_s21 = sld [smem:[#allocation7 + $0x8]] }
 0x3eb   : > { %931 = vrot.lane.b32.xlu1 %v929_v43, %s1661_s13 }
 0x3ec   : > { %869 = vrot.lane.b32.xlu0 %v867_v44, %s1661_s13 }
 0x3ee   : > { %v888_v62 = vstv %s1241_s21 }
 0x3ef   : > { %1055 = vrot.lane.b32.xlu1 %v1053_v47, %s1661_s13  ;;  %v889_v0 = vmul.f32 %v1926_v7, %v888_v62  ;;  %v1068_v62 = vstv %s1269_s6 }
 0x3f0   : > { %993 = vrot.lane.b32.xlu0 %v991_v48, %s1661_s13  ;;  %s1261_s13 = sld [smem:[#allocation7 + $0x18]] }
 0x3f3   : > { %939 = vrot.lane.b32.xlu1 %v937_v51, %s1662_s15 }
 0x3f4   : > { %877 = vrot.lane.b32.xlu0 %v875_v52, %s1662_s15 }
 0x3f6   : > { %v1012_v3 = vstv %s1261_s13 }
 0x3f7   : > { %1063 = vrot.lane.b32.xlu1 %v1061_v55, %s1662_s15  ;;  %v1013_v8 = vmul.f32 %v1012_v3, %v1926_v7 }
 0x3f8   : > { %1001 = vrot.lane.b32.xlu0 %v999_v57, %s1662_s15  ;;  %s1249_s15 = sld [smem:[#allocation10 + $0x1]] }
 0x3fe   : > { %v944_v49 = vstv %s1249_s15 }
 0x43d   : > { %v957_v58 = vpop.permute.xlu1 %956 }
 0x43e   : > { %v833_v59 = vpop.permute.xlu0 %832  ;;  %v959_v23 = vadd.f32 %v957_v58, %v951_v11 }
 0x43f   : > { %v835_v12 = vadd.f32 %v833_v59, %v827_v2 }
 0x441   : > { %v1019_v60 = vpop.permute.xlu1 %1018 }
 0x442   : > { %v895_v61 = vpop.permute.xlu0 %894  ;;  %v1021_v19 = vadd.f32 %v1019_v60, %v1013_v8 }
 0x443   : > { %v897_v33 = vadd.f32 %v895_v61, %v889_v0  ;;  %v1006_v0 = vstv %s1259_s11 }
 0x445   : > { %v903_v56 = vpop.permute.xlu1 %902 }
 0x446   : > { %v841_v1 = vpop.permute.xlu0 %840  ;;  %v905_v13 = vadd.f32 %v903_v56, %v897_v33 }
 0x447   : > { %v843_v15 = vadd.f32 %v841_v1, %v835_v12 }
 0x449   : > { %v1027_v5 = vpop.permute.xlu1 %1026 }
 0x44a   : > { %v965_v9 = vpop.permute.xlu0 %964  ;;  %v1029_v25 = vadd.f32 %v1027_v5, %v1021_v19 }
 0x44b   : > { %v967_v7 = vadd.f32 %v965_v9, %v959_v23 }
 0x44d   : > { %v911_v16 = vpop.permute.xlu1 %910 }
 0x44e   : > { %v913_v20 = vadd.f32 %v911_v16, %v905_v13  ;;  %v849_v21 = vpop.permute.xlu0 %848 }
 0x44f   : > { %v851_v24 = vadd.f32 %v849_v21, %v843_v15 }
 0x450   : > { %v918_v26 = vadd.f32 %v917_v14, %v913_v20 }
 0x451   : > { %v1035_v28 = vpop.permute.xlu1 %1034  ;;  %v856_v29 = vadd.f32 %v855_v17, %v851_v24 }
 0x452   : > { %v1037_v32 = vadd.f32 %v1035_v28, %v1029_v25  ;;  %v973_v34 = vpop.permute.xlu0 %972 }
 0x453   : > { %v975_v35 = vadd.f32 %v973_v34, %v967_v7 }
 0x454   : > { %v1042_v36 = vadd.f32 %v1041_v27, %v1037_v32 }
 0x455   : > { %v924_v37 = vpop.permute.xlu1 %923  ;;  %v980_v38 = vadd.f32 %v979_v30, %v975_v35 }
 0x456   : > { %v862_v39 = vpop.permute.xlu0 %861  ;;  %v926_v45 = vadd.f32 %v924_v37, %v918_v26 }
 0x457   : > { %v864_v47 = vadd.f32 %v862_v39, %v856_v29 }
 0x459   : > { %v1048_v40 = vpop.permute.xlu1 %1047 }
 0x45a   : > { %v986_v41 = vpop.permute.xlu0 %985  ;;  %v1050_v51 = vadd.f32 %v1048_v40, %v1042_v36 }
 0x45b   : > { %v988_v55 = vadd.f32 %v986_v41, %v980_v38 }
 0x45d   : > { %v932_v42 = vpop.permute.xlu1 %931 }
 0x45e   : > { %v870_v43 = vpop.permute.xlu0 %869  ;;  %v934_v31 = vadd.f32 %v932_v42, %v926_v45 }
 0x45f   : > { %v872_v48 = vadd.f32 %v870_v43, %v864_v47 }
 0x461   : > { %v1056_v44 = vpop.permute.xlu1 %1055 }
 0x462   : > { %v994_v46 = vpop.permute.xlu0 %993  ;;  %v1058_v58 = vadd.f32 %v1056_v44, %v1050_v51 }
 0x463   : > { %v996_v60 = vadd.f32 %v994_v46, %v988_v55 }
 0x465   : > { %v940_v50 = vpop.permute.xlu1 %939 }
 0x466   : > { %v942_v52 = vadd.f32 %v940_v50, %v934_v31  ;;  %v878_v54 = vpop.permute.xlu0 %877 }
 0x467   : > { %v880_v57 = vadd.f32 %v878_v54, %v872_v48 }
 0x468   : > { %v945_v59 = vadd.f32 %v944_v49, %v942_v52 }
 0x469   : > { %v883_v61 = vadd.f32 %v882_v53, %v880_v57  ;;  %v1064_v63 = vpop.permute.xlu1 %1063 }
 0x46a   : > { %1250 = vst.msk [vmem:[%s1827_s28 + $0x8] sm:$0xff] %vm884_vm4, %v945_v59  ;;  %v1066_v56 = vadd.f32 %v1064_v63, %v1058_v58  ;;  %v1002_v1 = vpop.permute.xlu0 %1001 }
 0x46b   : > { %885 = vst.msk [vmem:[%s1827_s28] sm:$0xff] %vm884_vm4, %v883_v61  ;;  %v1004_v2 = vadd.f32 %v1002_v1, %v996_v60 }
 0x46c   : > { %v1069_v3 = vadd.f32 %v1068_v62, %v1066_v56 }
 0x46d   : > { %v1007_v4 = vadd.f32 %v1006_v0, %v1004_v2 }
 0x46e   : > { %1270 = vst.msk [vmem:[%s1827_s28 + $0x18] sm:$0xff] %vm884_vm4, %v1069_v3 }
 0x46f   : > { %1260 = vst.msk [vmem:[%s1827_s28 + $0x10] sm:$0xff] %vm884_vm4, %v1007_v4 }
 0x470 PF: > { %s1282_s21 = sshll.u32 %s1634_s23, 9  ;;  %s1086_s22 = sshll.u32 %s1827_s28, 4  ;;  %s2001_s22 = int_to_ptr.vmem [resolvable:$true] %s1086_s22 }
 0x471   : > { %s1998_s16 = scalar_lea.hbm %s2068_s5, %s1282_s21  ;;  %s2005_s17 = scalar_lea.sflag [#allocation8], %s261_s25 }
 0x472   : > { %s1532_s12 = scalar_lea.vmem %s2001_s22, 512  ;;  %p2084_p2 = scmp.ne.s32.totalorder %s2076_s9, 0 }
 0x473   : > { %p1533_p0 = scmp.ne.s32.totalorder %s2001_s22, %s1532_s12  ;;  %s1663_s23 = smov [#allocation12]  }
 0x474   : > { %s1536_s29 = sshll.u32 %s1663_s23, 4  ;;  %s1537_s29 = int_to_ptr.vmem [resolvable:$false] %s1536_s29 }
 0x475   : > { %p1534_p4 = pnand %p1533_p0, %p2084_p2  ;;  %s1538_s15 = scalar_lea.vmem %s1537_s29, 1024 }
 0x476   : > { %p1539_p7 = scmp.lt.s32.totalorder %s2001_s22, %s1537_s29  ;;  %p1540_p6 = scmp.lt.s32.totalorder %s1538_s15, %s1532_s12 }
 0x477   : > { %p1535_p5 = pneg %p1534_p4 }
 0x478   : > { %p1541_p8 = por %p1540_p6, %p1539_p7 }
 0x47a   : > { %p1542_p11 = pnand %p1541_p8, %p1535_p5 }
 0x47c   : > { %1545 = shalt.err (!%p1542_p11)
}
 0x47d   : > { %s1546_s25 = scalar_lea.hbm %s1998_s16, 512  ;;  %s1550_s6 = scalar_lea.hbm %s2068_s5, 1024 }
 0x47e   : > { %p1547_p12 = scmp.ne.s32.totalorder %s1998_s16, %s1546_s25  ;;  %p1551_p9 = scmp.lt.u32.totalorder %s1998_s16, %s2068_s5 }
 0x47f   : > { %p1552_p10 = scmp.lt.u32.totalorder %s1550_s6, %s1546_s25  ;;  %p1554_p0 = scmp.lt.u32.totalorder %s1546_s25, %s1998_s16 }
 0x480   : > { %p1548_p1 = pnand %p1547_p12, %p2084_p2 }
 0x481   : > { %p1553_p13 = por %p1552_p10, %p1551_p9 }
 0x482   : > { %p1549_p3 = pneg %p1548_p1 }
 0x483   : > { %p1555_p4 = por %p1554_p0, %p1553_p13 }
 0x485   : > { %p1556_p5 = pnand %p1555_p4, %p1549_p3 }
 0x487   : > { %1559 = shalt.err (!%p1556_p5)
}
 0x488   : > { %s1664_s8 = smov 128   ;;  %s1665_s13 = smov 8  }
 0x489   : > { %1349 = dma.vmem_to_hbm [thread:$0]  (%p2084_p2), %s2001_s22, 512, %s1998_s16, %s2005_s17, %s1664_s8, %s1664_s8, %s1665_s13  }
 0x48a PF: > { %p1366_p7 = scmp.ge.s32.totalorder %s1650_s27, 2  ;;  %s1101_s12 = sand.u32 1, %s1614_s18  }
 0x48b   : > { %p2085_p6 = scmp.ne.s32.totalorder %s2078_s10, 0  ;;  %s1102_s23 = scalar_lea.sflag [#allocation8], %s1101_s12 }
 0x48d   : > { %p1359_p8 = pnand %p1366_p7, %p2085_p6 }
 0x48f   : > { %1609 = dma.done.wait (!%p1359_p8), %s1102_s23, 512  }
 0x490   : > { %1611 = vsyncadd (!%p1359_p8), %s1102_s23, 4294966784  ;;  %s20_s27 = sadd.s32 1, %s1650_s27   ;;  %s2086_s22 = sld [smem:[#allocation16_spill]] }
 0x491   : > { %p17_p11 = scmp.ge.s32.totalorder %s20_s27, 10   ;;  %s2087_s9 = sld [smem:[#allocation17_spill]] }
 0x492   : > { %s2088_s25 = sld [smem:[#allocation18_spill]]  ;;  %s2089_s18 = smov %s1618_s19 }
 0x493   : > { %s2090_s19 = smov %s1622_s20  ;;  %s2091_s20 = smov %s1799_s30 }
 0x494   : > { %s2092_s21 = smov %s1638_s24  ;;  %s2093_s23 = smov %s1646_s26 }
 0x495   : > { %s2095_s26 = smov %s2105_s7  ;;  %19 = sbr.rel (!%p17_p11) target bundleno = 8 (0x8), region = 106 }
 0x497   : > { %s2094_s24 = smov %s2087_s9 }
 0x49c   :  { %1107 = vsyncpa [#allocation8], 1 }
 0x49d   :  { %1109 = vsyncpa [#allocation8 + $0x1], 1 }
 0x49e   :  { %1110 = vsyncpa [#allocation9], 1 }
 0x49f   :  { %1112 = vsyncpa [#allocation9 + $0x1], 1 }
 0x4a0   :  { %1113 = vsyncpa [#allocation11], 1 }

</bundles_post_ra>
